<compile_context>
chip_gen: v7x
topology: tpu7x:2x2x1
jax: 0.10.0
libtpu: 0.0.40
codegen_flags: <defaults>
</compile_context>

<pallas_src>
import functools

import jax
import jax.numpy as jnp
from jax.experimental import pallas as pl
from jax.experimental.pallas import tpu as pltpu


# --------------------------- weight preprocessing --------------------------- #

def _combined_phase_weights(conv_w):
    """conv_w: (cout, cin, 3, 3) torch layout -> (2, 6*cin, 2*cout) phase weights.

    For nearest-x2 upsample followed by a 3x3 conv (pad=1), output pixel
    (2i+ry, 2j+rx) only reads a 2x2 half-res neighbourhood; grouping both
    column phases rx into the N dimension, output-row-phase ry reads half-res
    rows {i+ry, i+ry+1} and cols {j, j+1, j+2} of the 1-px padded feature, so
    K = (2 rows x 3 cols) * cin and N = (2 col phases) * cout.
    """
    cin = conv_w.shape[1]
    cout = conv_w.shape[0]
    w = jnp.transpose(conv_w, (2, 3, 1, 0)).astype(jnp.float32)   # (ky, kx, cin, cout)
    # Which original row taps ky collapse onto half-res row offset dr for output
    # row phase ry (up[p] = feat[(p-1)//2] after the 1-px pad).
    a_row = jnp.array([[[1., 0., 0.], [0., 1., 1.]],               # ry=0: (dr, ky)
                       [[1., 1., 0.], [0., 0., 1.]]], jnp.float32)  # ry=1
    a_col = jnp.array([[[1., 0., 0.], [0., 1., 1.], [0., 0., 0.]],  # rx=0: (dc, kx)
                       [[0., 0., 0.], [1., 1., 0.], [0., 0., 1.]]], jnp.float32)  # rx=1
    # wc[ry, dr, dc, ci, rx, co]
    wc = jnp.einsum("rak,xbl,klcd->rabcxd", a_row, a_col, w)
    return wc.reshape(2, 6 * cin, 2 * cout)


# ------------------------------- Pallas kernel ------------------------------ #

def _patch_upsample_kernel(tok_ref, fp_ref, wc_ref, b2_ref, tw_ref,
                           tok_out_ref, img_out_ref,
                           *, bb, T, h, w, cin, cout, mxu_dtype):
    # --- token projection (rides along; no separate pallas_call launch) ---
    tok = tok_ref[...].reshape(bb * T, cin).astype(mxu_dtype)
    tvals = jnp.dot(tok, tw_ref[...], preferred_element_type=jnp.float32)
    tok_out_ref[...] = tvals.reshape(bb, T, cout).astype(tok_out_ref.dtype)

    # --- fused nearest-x2 upsample + 3x3 conv: 2 phase-pair im2col matmuls ---
    # fp_ref holds the 1-px zero-padded HALF-res feature: (bb, h+2, w+2, cin).
    for ry in range(2):
        cols = []
        for dr in range(2):
            for dc in range(3):
                cols.append(fp_ref[:, ry + dr:ry + dr + h, dc:dc + w, :])
        x2col = jnp.concatenate(cols, axis=-1)                    # (bb, h, w, 6*cin)
        x2col = x2col.reshape(bb * h * w, 6 * cin).astype(mxu_dtype)
        acc = jnp.dot(x2col, wc_ref[ry],                          # (bb*h*w, 2*cout)
                      preferred_element_type=jnp.float32)
        acc = acc + b2_ref[...]                                   # bias tiled over (rx, co)
        # img_out_ref is (bb, h, 2, w, 2*cout): byte-identical to (bb, H*W, cout),
        # so each row-phase is a plain contiguous store (no transpose needed).
        img_out_ref[:, :, ry, :, :] = (
            acc.reshape(bb, h, w, 2 * cout).astype(img_out_ref.dtype))


# ------------------------------ module forward ------------------------------ #

def patch_upsample_forward(x, params, *, in_dim, out_dim, feat_size,
                           has_token=1, with_token=True,
                           mxu_dtype=jnp.bfloat16):
    """x: (B, has_token + (H//2)*(W//2), in_dim) -> (B, has_token + H*W, out_dim)."""
    B = x.shape[0]
    H, W = feat_size
    h, w = H // 2, W // 2
    T = int(has_token)

    token = x[:, :T, :]                                   # (B, T, cin)
    feat = x[:, T:, :].reshape(B, h, w, in_dim)           # same row-major order as torch
    # 1-px zero pad of the *half-res* feature only (tiny); the 4x upsampled
    # image is never materialized -- the upsample lives in the phase weights.
    fp = jnp.pad(feat, ((0, 0), (1, 1), (1, 1), (0, 0)))

    wc = _combined_phase_weights(params["conv_w"]).astype(mxu_dtype)   # (2, 6*cin, 2*cout)
    b2 = jnp.tile(params["conv_b"], 2).reshape(1, 2 * out_dim).astype(jnp.float32)
    tw = jnp.transpose(params["tok_w"], (1, 0)).astype(mxu_dtype)      # (cin, cout)

    bb = B if B <= 8 else 8                               # batch elements per grid step
    assert B % bb == 0, "pad B to a multiple of the batch block"
    grid = (B // bb,)

    kern = functools.partial(_patch_upsample_kernel, bb=bb, T=T, h=h, w=w,
                             cin=in_dim, cout=out_dim, mxu_dtype=mxu_dtype)

    tok_out, img_out = pl.pallas_call(
        kern,
        grid=grid,
        out_shape=(jax.ShapeDtypeStruct((B, T, out_dim), jnp.float32),
                   jax.ShapeDtypeStruct((B, h, 2, w, 2 * out_dim), jnp.float32)),
        in_specs=[
            pl.BlockSpec((bb, T, in_dim), lambda g: (g, 0, 0)),
            pl.BlockSpec((bb, h + 2, w + 2, in_dim), lambda g: (g, 0, 0, 0)),
            pl.BlockSpec((2, 6 * in_dim, 2 * out_dim), lambda g: (0, 0, 0)),
            pl.BlockSpec((1, 2 * out_dim), lambda g: (0, 0)),
            pl.BlockSpec((in_dim, out_dim), lambda g: (0, 0)),
        ],
        out_specs=(
            pl.BlockSpec((bb, T, out_dim), lambda g: (g, 0, 0)),
            pl.BlockSpec((bb, h, 2, w, 2 * out_dim), lambda g: (g, 0, 0, 0, 0)),
        ),
        compiler_params=pltpu.CompilerParams(dimension_semantics=("parallel",)),
    )(token, fp, wc, b2, tw)

    img = img_out.reshape(B, H * W, out_dim)              # free: identical byte layout
    if not with_token:
        # torch returns NCHW in this branch
        return img.reshape(B, H, W, out_dim).transpose(0, 3, 1, 2)
    return jnp.concatenate([tok_out, img], axis=1)        # (B, T + H*W, cout)


# ----------------------------------- main ----------------------------------- #

if __name__ == "__main__":
    B = 2
    in_dim, out_dim = 32, 16
    feat_size = (16, 16)
    has_token = 1
    H, W = feat_size
    n_tokens = has_token + (H // 2) * (W // 2)                    # 1 + 64 = 65

    key = jax.random.PRNGKey(0)
    kx, kw, kb, kt = jax.random.split(key, 4)

    x = jax.random.normal(kx, (B, n_tokens, in_dim), jnp.float32)
    params = {
        # torch layouts: conv (Cout, Cin, 3, 3) + (Cout,), Linear weight (Cout, Cin)
        "conv_w": jax.random.normal(kw, (out_dim, in_dim, 3, 3), jnp.float32) * 0.05,
        "conv_b": jax.random.normal(kb, (out_dim,), jnp.float32) * 0.05,
        "tok_w": jax.random.normal(kt, (out_dim, in_dim), jnp.float32) * 0.05,
    }

    fwd = jax.jit(functools.partial(
        patch_upsample_forward, in_dim=in_dim, out_dim=out_dim,
        feat_size=feat_size, has_token=has_token, with_token=True))
    out = jax.block_until_ready(fwd(x, params))                   # bf16 MXU path
    assert out.shape == (B, 1 + H * W, out_dim), out.shape

    # exact-f32 MXU variant for a tight numerical check
    out_f32 = jax.block_until_ready(
        patch_upsample_forward(x, params, in_dim=in_dim, out_dim=out_dim,
                               feat_size=feat_size, has_token=has_token,
                               with_token=True, mxu_dtype=jnp.float32))

    # pure-JAX reference (upsample explicitly, lax.conv, linear token proj)
    token = x[:, :has_token, :]
    feat = x[:, has_token:, :].reshape(B, H // 2, W // 2, in_dim)
    x_up = jnp.repeat(jnp.repeat(feat, 2, axis=1), 2, axis=2)
    w_hwio = jnp.transpose(params["conv_w"], (2, 3, 1, 0))
    ref_conv = jax.lax.conv_general_dilated(
        x_up, w_hwio, window_strides=(1, 1), padding="SAME",
        dimension_numbers=("NHWC", "HWIO", "NHWC")) + params["conv_b"].reshape(1, 1, 1, -1)
    ref_tok = jnp.einsum("btc,dc->btd", token, params["tok_w"])
    ref = jnp.concatenate([ref_tok, ref_conv.reshape(B, H * W, out_dim)], axis=1)

    err_f32 = float(jnp.max(jnp.abs(out_f32 - ref)))
    assert jnp.allclose(out_f32, ref, atol=1e-4, rtol=1e-4), err_f32
    err_bf16 = float(jnp.max(jnp.abs(out - ref)))
    assert jnp.allclose(out, ref, atol=5e-2, rtol=5e-2), err_bf16

    print("KERNEL_OK")
</pallas_src>

<mosaic_0001>
module attributes {stable_mosaic.version = 11 : i64} {
  func.func @_patch_upsample_kernel(%arg0: i32, %arg1: memref<2x1x32xf32, #tpu.memory_space<vmem>>, %arg2: memref<2x10x10x32xf32, #tpu.memory_space<vmem>>, %arg3: memref<2x192x32xbf16, #tpu.memory_space<vmem>>, %arg4: memref<1x32xf32, #tpu.memory_space<vmem>>, %arg5: memref<32x16xbf16, #tpu.memory_space<vmem>>, %arg6: memref<2x1x16xf32, #tpu.memory_space<vmem>>, %arg7: memref<2x8x2x8x32xf32, #tpu.memory_space<vmem>>) attributes {dimension_semantics = [#tpu.dimension_semantics<parallel>], iteration_bounds = array<i64: 1>, scalar_prefetch = 0 : i64, scratch_operands = 0 : i64, tpu.core_type = #tpu.core_type<tc>, window_params = [{transform_indices = @transform_0, window_bounds = array<i64: 2, 1, 32>}, {transform_indices = @transform_1, window_bounds = array<i64: 2, 10, 10, 32>}, {pipeline_mode = #tpu.pipeline_mode<synchronous>, transform_indices = @transform_2, window_bounds = array<i64: 2, 192, 32>}, {pipeline_mode = #tpu.pipeline_mode<synchronous>, transform_indices = @transform_3, window_bounds = array<i64: 1, 32>}, {pipeline_mode = #tpu.pipeline_mode<synchronous>, transform_indices = @transform_4, window_bounds = array<i64: 32, 16>}, {transform_indices = @transform_5, window_bounds = array<i64: 2, 1, 16>}, {transform_indices = @transform_6, window_bounds = array<i64: 2, 8, 2, 8, 32>}]} {
    %c0 = arith.constant 0 : index
    %c0_0 = arith.constant 0 : index
    %c0_1 = arith.constant 0 : index
    %0 = vector.load %arg1[%c0, %c0_0, %c0_1] : memref<2x1x32xf32, #tpu.memory_space<vmem>>, vector<2x1x32xf32>
    %1 = vector.shape_cast %0 : vector<2x1x32xf32> to vector<2x32xf32>
    %2 = arith.truncf %1 : vector<2x32xf32> to vector<2x32xbf16>
    %c0_2 = arith.constant 0 : index
    %c0_3 = arith.constant 0 : index
    %3 = vector.load %arg5[%c0_2, %c0_3] : memref<32x16xbf16, #tpu.memory_space<vmem>>, vector<32x16xbf16>
    %cst = arith.constant dense<0.000000e+00> : vector<2x16xf32>
    %4 = tpu.matmul %2, %3, %cst {dimension_numbers = #tpu.dot_dimension_numbers<[1], [0], [0], [1], [0, 0, 1, 1], [], []>} : vector<2x32xbf16>, vector<32x16xbf16>, vector<2x16xf32> -> vector<2x16xf32>
    %5 = vector.shape_cast %4 : vector<2x16xf32> to vector<2x1x16xf32>
    %c0_4 = arith.constant 0 : index
    %c0_5 = arith.constant 0 : index
    %c0_6 = arith.constant 0 : index
    %6 = vector.load %arg6[%c0_4, %c0_5, %c0_6] : memref<2x1x16xf32, #tpu.memory_space<vmem>>, vector<2x1x16xf32>
    tpu.vector_store %arg6[%c0_4, %c0_5, %c0_6], %5 {strides = array<i32>} : memref<2x1x16xf32, #tpu.memory_space<vmem>>, vector<2x1x16xf32>,
    %c0_7 = arith.constant 0 : index
    %c0_8 = arith.constant 0 : index
    %c0_9 = arith.constant 0 : index
    %c0_10 = arith.constant 0 : index
    %7 = vector.load %arg2[%c0_7, %c0_8, %c0_9, %c0_10] : memref<2x10x10x32xf32, #tpu.memory_space<vmem>>, vector<2x8x8x32xf32>
    %c0_11 = arith.constant 0 : index
    %c0_12 = arith.constant 0 : index
    %c1 = arith.constant 1 : index
    %c0_13 = arith.constant 0 : index
    %8 = vector.load %arg2[%c0_11, %c0_12, %c1, %c0_13] : memref<2x10x10x32xf32, #tpu.memory_space<vmem>>, vector<2x8x8x32xf32>
    %c0_14 = arith.constant 0 : index
    %c0_15 = arith.constant 0 : index
    %c2 = arith.constant 2 : index
    %c0_16 = arith.constant 0 : index
    %9 = vector.load %arg2[%c0_14, %c0_15, %c2, %c0_16] : memref<2x10x10x32xf32, #tpu.memory_space<vmem>>, vector<2x8x8x32xf32>
    %c0_17 = arith.constant 0 : index
    %c1_18 = arith.constant 1 : index
    %c0_19 = arith.constant 0 : index
    %c0_20 = arith.constant 0 : index
    %10 = vector.load %arg2[%c0_17, %c1_18, %c0_19, %c0_20] : memref<2x10x10x32xf32, #tpu.memory_space<vmem>>, vector<2x8x8x32xf32>
    %c0_21 = arith.constant 0 : index
    %c1_22 = arith.constant 1 : index
    %c1_23 = arith.constant 1 : index
    %c0_24 = arith.constant 0 : index
    %11 = vector.load %arg2[%c0_21, %c1_22, %c1_23, %c0_24] : memref<2x10x10x32xf32, #tpu.memory_space<vmem>>, vector<2x8x8x32xf32>
    %c0_25 = arith.constant 0 : index
    %c1_26 = arith.constant 1 : index
    %c2_27 = arith.constant 2 : index
    %c0_28 = arith.constant 0 : index
    %12 = vector.load %arg2[%c0_25, %c1_26, %c2_27, %c0_28] : memref<2x10x10x32xf32, #tpu.memory_space<vmem>>, vector<2x8x8x32xf32>
    %13 = tpu.concatenate %7, %8, %9, %10, %11, %12 in 3 : vector<2x8x8x32xf32>, vector<2x8x8x32xf32>, vector<2x8x8x32xf32>, vector<2x8x8x32xf32>, vector<2x8x8x32xf32>, vector<2x8x8x32xf32> -> vector<2x8x8x192xf32>
    %14 = vector.shape_cast %13 : vector<2x8x8x192xf32> to vector<128x192xf32>
    %15 = arith.truncf %14 : vector<128x192xf32> to vector<128x192xbf16>
    %c0_29 = arith.constant 0 : index
    %c0_30 = arith.constant 0 : index
    %c0_31 = arith.constant 0 : index
    %16 = vector.load %arg3[%c0_29, %c0_30, %c0_31] : memref<2x192x32xbf16, #tpu.memory_space<vmem>>, vector<1x192x32xbf16>
    %17 = vector.shape_cast %16 : vector<1x192x32xbf16> to vector<192x32xbf16>
    %cst_32 = arith.constant dense<0.000000e+00> : vector<128x32xf32>
    %18 = tpu.matmul %15, %17, %cst_32 {dimension_numbers = #tpu.dot_dimension_numbers<[1], [0], [0], [1], [0, 0, 1, 1], [], []>} : vector<128x192xbf16>, vector<192x32xbf16>, vector<128x32xf32> -> vector<128x32xf32>
    %c0_33 = arith.constant 0 : index
    %c0_34 = arith.constant 0 : index
    %19 = vector.load %arg4[%c0_33, %c0_34] : memref<1x32xf32, #tpu.memory_space<vmem>>, vector<1x32xf32>
    %20 = vector.broadcast %19 : vector<1x32xf32> to vector<128x32xf32>
    %21 = arith.addf %18, %20 : vector<128x32xf32>
    %22 = vector.shape_cast %21 : vector<128x32xf32> to vector<2x8x8x32xf32>
    %c0_35 = arith.constant 0 : index
    %c0_36 = arith.constant 0 : index
    %c0_37 = arith.constant 0 : index
    %c0_38 = arith.constant 0 : index
    %c0_39 = arith.constant 0 : index
    %23 = vector.load %arg7[%c0_35, %c0_36, %c0_37, %c0_38, %c0_39] : memref<2x8x2x8x32xf32, #tpu.memory_space<vmem>>, vector<2x8x1x8x32xf32>
    %24 = vector.shape_cast %23 : vector<2x8x1x8x32xf32> to vector<2x8x8x32xf32>
    %25 = vector.shape_cast %22 : vector<2x8x8x32xf32> to vector<2x8x1x8x32xf32>
    tpu.vector_store %arg7[%c0_35, %c0_36, %c0_37, %c0_38, %c0_39], %25 {strides = array<i32>} : memref<2x8x2x8x32xf32, #tpu.memory_space<vmem>>, vector<2x8x1x8x32xf32>,
    %c0_40 = arith.constant 0 : index
    %c1_41 = arith.constant 1 : index
    %c0_42 = arith.constant 0 : index
    %c0_43 = arith.constant 0 : index
    %26 = vector.load %arg2[%c0_40, %c1_41, %c0_42, %c0_43] : memref<2x10x10x32xf32, #tpu.memory_space<vmem>>, vector<2x8x8x32xf32>
    %c0_44 = arith.constant 0 : index
    %c1_45 = arith.constant 1 : index
    %c1_46 = arith.constant 1 : index
    %c0_47 = arith.constant 0 : index
    %27 = vector.load %arg2[%c0_44, %c1_45, %c1_46, %c0_47] : memref<2x10x10x32xf32, #tpu.memory_space<vmem>>, vector<2x8x8x32xf32>
    %c0_48 = arith.constant 0 : index
    %c1_49 = arith.constant 1 : index
    %c2_50 = arith.constant 2 : index
    %c0_51 = arith.constant 0 : index
    %28 = vector.load %arg2[%c0_48, %c1_49, %c2_50, %c0_51] : memref<2x10x10x32xf32, #tpu.memory_space<vmem>>, vector<2x8x8x32xf32>
    %c0_52 = arith.constant 0 : index
    %c2_53 = arith.constant 2 : index
    %c0_54 = arith.constant 0 : index
    %c0_55 = arith.constant 0 : index
    %29 = vector.load %arg2[%c0_52, %c2_53, %c0_54, %c0_55] : memref<2x10x10x32xf32, #tpu.memory_space<vmem>>, vector<2x8x8x32xf32>
    %c0_56 = arith.constant 0 : index
    %c2_57 = arith.constant 2 : index
    %c1_58 = arith.constant 1 : index
    %c0_59 = arith.constant 0 : index
    %30 = vector.load %arg2[%c0_56, %c2_57, %c1_58, %c0_59] : memref<2x10x10x32xf32, #tpu.memory_space<vmem>>, vector<2x8x8x32xf32>
    %c0_60 = arith.constant 0 : index
    %c2_61 = arith.constant 2 : index
    %c2_62 = arith.constant 2 : index
    %c0_63 = arith.constant 0 : index
    %31 = vector.load %arg2[%c0_60, %c2_61, %c2_62, %c0_63] : memref<2x10x10x32xf32, #tpu.memory_space<vmem>>, vector<2x8x8x32xf32>
    %32 = tpu.concatenate %26, %27, %28, %29, %30, %31 in 3 : vector<2x8x8x32xf32>, vector<2x8x8x32xf32>, vector<2x8x8x32xf32>, vector<2x8x8x32xf32>, vector<2x8x8x32xf32>, vector<2x8x8x32xf32> -> vector<2x8x8x192xf32>
    %33 = vector.shape_cast %32 : vector<2x8x8x192xf32> to vector<128x192xf32>
    %34 = arith.truncf %33 : vector<128x192xf32> to vector<128x192xbf16>
    %c1_64 = arith.constant 1 : index
    %c0_65 = arith.constant 0 : index
    %c0_66 = arith.constant 0 : index
    %35 = vector.load %arg3[%c1_64, %c0_65, %c0_66] : memref<2x192x32xbf16, #tpu.memory_space<vmem>>, vector<1x192x32xbf16>
    %36 = vector.shape_cast %35 : vector<1x192x32xbf16> to vector<192x32xbf16>
    %cst_67 = arith.constant dense<0.000000e+00> : vector<128x32xf32>
    %37 = tpu.matmul %34, %36, %cst_67 {dimension_numbers = #tpu.dot_dimension_numbers<[1], [0], [0], [1], [0, 0, 1, 1], [], []>} : vector<128x192xbf16>, vector<192x32xbf16>, vector<128x32xf32> -> vector<128x32xf32>
    %c0_68 = arith.constant 0 : index
    %c0_69 = arith.constant 0 : index
    %38 = vector.load %arg4[%c0_68, %c0_69] : memref<1x32xf32, #tpu.memory_space<vmem>>, vector<1x32xf32>
    %39 = vector.broadcast %38 : vector<1x32xf32> to vector<128x32xf32>
    %40 = arith.addf %37, %39 : vector<128x32xf32>
    %41 = vector.shape_cast %40 : vector<128x32xf32> to vector<2x8x8x32xf32>
    %c0_70 = arith.constant 0 : index
    %c0_71 = arith.constant 0 : index
    %c1_72 = arith.constant 1 : index
    %c0_73 = arith.constant 0 : index
    %c0_74 = arith.constant 0 : index
    %42 = vector.load %arg7[%c0_70, %c0_71, %c1_72, %c0_73, %c0_74] : memref<2x8x2x8x32xf32, #tpu.memory_space<vmem>>, vector<2x8x1x8x32xf32>
    %43 = vector.shape_cast %42 : vector<2x8x1x8x32xf32> to vector<2x8x8x32xf32>
    %44 = vector.shape_cast %41 : vector<2x8x8x32xf32> to vector<2x8x1x8x32xf32>
    tpu.vector_store %arg7[%c0_70, %c0_71, %c1_72, %c0_73, %c0_74], %44 {strides = array<i32>} : memref<2x8x2x8x32xf32, #tpu.memory_space<vmem>>, vector<2x8x1x8x32xf32>,
    return
  }
  func.func @transform_0(%arg0: i32) -> (i32, i32, i32) {
    %c0_i32 = arith.constant 0 : i32
    %c0_i32_0 = arith.constant 0 : i32
    %c0_i32_1 = arith.constant 0 : i32
    return %arg0, %c0_i32, %c0_i32_0 : i32, i32, i32
  }
  func.func @transform_1(%arg0: i32) -> (i32, i32, i32, i32) {
    %c0_i32 = arith.constant 0 : i32
    %c0_i32_0 = arith.constant 0 : i32
    %c0_i32_1 = arith.constant 0 : i32
    %c0_i32_2 = arith.constant 0 : i32
    return %arg0, %c0_i32, %c0_i32_0, %c0_i32_1 : i32, i32, i32, i32
  }
  func.func @transform_2(%arg0: i32) -> (i32, i32, i32) {
    %c0_i32 = arith.constant 0 : i32
    %c0_i32_0 = arith.constant 0 : i32
    %c0_i32_1 = arith.constant 0 : i32
    %c0_i32_2 = arith.constant 0 : i32
    return %c0_i32, %c0_i32_0, %c0_i32_1 : i32, i32, i32
  }
  func.func @transform_3(%arg0: i32) -> (i32, i32) {
    %c0_i32 = arith.constant 0 : i32
    %c0_i32_0 = arith.constant 0 : i32
    %c0_i32_1 = arith.constant 0 : i32
    return %c0_i32, %c0_i32_0 : i32, i32
  }
  func.func @transform_4(%arg0: i32) -> (i32, i32) {
    %c0_i32 = arith.constant 0 : i32
    %c0_i32_0 = arith.constant 0 : i32
    %c0_i32_1 = arith.constant 0 : i32
    return %c0_i32, %c0_i32_0 : i32, i32
  }
  func.func @transform_5(%arg0: i32) -> (i32, i32, i32) {
    %c0_i32 = arith.constant 0 : i32
    %c0_i32_0 = arith.constant 0 : i32
    %c0_i32_1 = arith.constant 0 : i32
    return %arg0, %c0_i32, %c0_i32_0 : i32, i32, i32
  }
  func.func @transform_6(%arg0: i32) -> (i32, i32, i32, i32, i32) {
    %c0_i32 = arith.constant 0 : i32
    %c0_i32_0 = arith.constant 0 : i32
    %c0_i32_1 = arith.constant 0 : i32
    %c0_i32_2 = arith.constant 0 : i32
    %c0_i32_3 = arith.constant 0 : i32
    return %arg0, %c0_i32, %c0_i32_0, %c0_i32_1, %c0_i32_2 : i32, i32, i32, i32, i32
  }
}

</mosaic_0001>

<bundles_post_ra>
// kernel: tile.8
= control target key start
LH: loop header
LB: loop body
LE: loop exit
PB: predicated region body
PF: predicated region fallthrough
CT: control target
= control target key end

     0   :  { %s22_s0 = inlined_call_operand.vmem [shape: f32[16], index: 0, kind: input, shape index: {}]   ;;  %s23_s1 = inlined_call_operand.vmem [shape: f32[2,16], index: 1, kind: output, shape index: {}]  }
   0x1   :  { %v4_v0 = vld [vmem:[%s22_s0] ss:$0 sm:$0xff] }
   0x2   :  { %5 = vst [vmem:[%s23_s1] sm:$0x3] %v4_v0 }

// kernel: tile.9
= control target key start
LH: loop header
LB: loop body
LE: loop exit
PB: predicated region body
PF: predicated region fallthrough
CT: control target
= control target key end

     0   :  { %vm7_vm0 = vcmask 130048   ;;  %vm13_vm1 = vcmask 261248   ;;  %s39_s0 = inlined_call_operand.vmem [shape: f32[2,16], index: 0, kind: input, shape index: {}]   ;;  %s40_s1 = inlined_call_operand.vmem [shape: f32[1,32], index: 1, kind: output, shape index: {}]  }
   0x1   :  { %v4_v0 = vld [vmem:[%s39_s0] sm:$0x3]  ;;  %s22_s0 = smov 16  }
   0x2   :  { %5 = vst [vmem:[#allocation1] sm:$0x3] %v4_v0 }
   0x9   :  { %v10_v1 = vld [vmem:[#allocation1 + $0x1] sm:$0x1]   ;;  %v6_v2 = vld [vmem:[#allocation1] sm:$0x1]  }
   0xa   :  { %11 = vrot.lane.b32.xlu0 %v10_v1, %s22_s0  ;;  %8 = vst.msk [vmem:[#allocation0] sm:$0x1] %vm7_vm0, %v6_v2  }
  0x7c   :  { %v12_v3 = vpop.permute.xlu0 %11  }
  0x7d   :  { %14 = vst.msk [vmem:[#allocation0] sm:$0x1] %vm13_vm1, %v12_v3  }
  0x84   :  { %v18_v4 = vld [vmem:[#allocation0] sm:$0x1] }
  0x85   :  { %20 = vst [vmem:[%s40_s1] sm:$0x1] %v18_v4 }

// kernel: patch_upsample_forward.1
= control target key start
LH: loop header
LB: loop body
LE: loop exit
PB: predicated region body
PF: predicated region fallthrough
CT: control target
= control target key end

     0   :  { %v2074_v3 = vmov 0.0   ;;  %vm2075_vm0 = vmmov 0   ;;  %v2076_v8 = vmov 0   ;;  %s2077_s9 = smov 64   ;;  %s2078_s10 = smov 32   ;;  %vm36_vm1 = vcmask 1041409   ;;  %s2965_s1 = inlined_call_operand.vmem [shape: f32[2,10,10,32], index: 1, kind: input, shape index: {}]   ;;  %s2966_s4 = inlined_call_operand.vmem [shape: bf16[32,16], index: 4, kind: input, shape index: {}]   ;;  %s2967_s0 = inlined_call_operand.vmem [shape: f32[2,1,32], index: 0, kind: input, shape index: {}]   ;;  %s2968_s2 = inlined_call_operand.vmem [shape: bf16[2,192,32], index: 2, kind: input, shape index: {}]   ;;  %s2969_s5 = inlined_call_operand.vmem [shape: f32[2,1,16], index: 5, kind: output, shape index: {0}]   ;;  %s2970_s3 = inlined_call_operand.vmem [shape: f32[1,32], index: 3, kind: input, shape index: {}]   ;;  %s2971_s6 = inlined_call_operand.vmem [shape: f32[2,8,2,8,32], index: 6, kind: output, shape index: {1}]  }
   0x1   :  { %v155_v0 = vld [vmem:[%s2965_s1 + $0x2] sm:$0xff]  ;;  %v156_v1 = vld [vmem:[%s2965_s1 + $0x12] sm:$0xff]  ;;  %1713 = vmatprep.subr.bf16.mxu0 %v2074_v3  ;;  %1717 = vmatprep.mubr.msk.bf16.mxu0 %vm2075_vm0, %v2074_v3  ;;  %s2079_s25 = smov 96   ;;  %v23_v25 = vld [vmem:[%s2967_s0] sm:$0x1]  ;;  %vm51_vm2 = vcmask 261120  }
   0x2   :  { %v139_v2 = vld [vmem:[%s2965_s1 + $0x1] sm:$0xff]  ;;  %v1738_v4 = vpack.i.bf16 %v156_v1, %v155_v0  ;;  %v2128_v5 = vld [vmem:[%s2965_s1 + $0x11] sm:$0xff]  ;;  %685 = vmatprep.subr.bf16.mxu1 %v2076_v8  ;;  %v25_v28 = vpack.c.bf16 %v23_v25, %v23_v25  ;;  %vm492_vm3 = vcmask 523264   ;;  %vm509_vm4 = vcmask 785408  }
   0x3   :  { %v1517_v6 = vld [vmem:[%s2965_s1 + $0x22] sm:$0xff]  ;;  %v1728_v9 = vpack.i.bf16 %v2128_v5, %v139_v2  ;;  %v1634_v12 = vld [vmem:[%s2965_s1 + $0x32] sm:$0xff]  ;;  %v24_v27 = vld [vmem:[%s2967_s0 + $0x1] sm:$0x1]  ;;  %vm120_vm5 = vcmask 122880  }
   0x4   :  { %v2136_v7 = vld [vmem:[%s2965_s1 + $0x21] sm:$0xff]  ;;  %1739 = vrot.lane.b32.xlu1 %v1738_v4, %s2077_s9  ;;  %v1743_v10 = vpack.i.bf16 %v1517_v6, %v156_v1  ;;  %v1753_v13 = vpack.i.bf16 %v1634_v12, %v1517_v6  ;;  %v2157_v15 = vld [vmem:[%s2965_s1 + $0x30] sm:$0xff]  ;;  %v26_v29 = vpack.c.bf16 %v24_v27, %v24_v27  ;;  %v33_v32 = vunpack.c.l.b16 %v25_v28  ;;  %v2056_v49 = vld [vmem:[%s2968_s2 + $0x18] sm:$0xff]  }
   0x5   :  { %1729 = vrot.lane.b32.xlu0 %v1728_v9, %s2078_s10  ;;  %v1733_v11 = vpack.i.bf16 %v2136_v7, %v2128_v5  ;;  %v2152_v14 = vld [vmem:[%s2965_s1 + $0x20] sm:$0xff]  ;;  %v2162_v16 = vld [vmem:[%s2965_s1 + $0x10] sm:$0xff]  ;;  %v2049_v24 = vld [vmem:[%s2966_s4 + $0x8] sm:$0xff]  }
   0x6   :  { %v1763_v17 = vpack.i.bf16 %v2157_v15, %v2152_v14  ;;  %v1758_v18 = vpack.i.bf16 %v2152_v14, %v2162_v16  ;;  %v2173_v19 = vld [vmem:[%s2965_s1 + $0x31] sm:$0xff]  ;;  %v2178_v20 = vld [vmem:[%s2965_s1 + $0x41] sm:$0xff]  ;;  %v34_v33 = vunpack.c.l.b16 %v26_v29 }
   0x7   :  { %v2048_v21 = vld [vmem:[%s2966_s4] sm:$0xff]   ;;  %v1773_v22 = vpack.i.bf16 %v2178_v20, %v2173_v19  ;;  %v1768_v26 = vpack.i.bf16 %v2173_v19, %v2136_v7  ;;  %v1636_v34 = vld [vmem:[%s2965_s1 + $0x52] sm:$0xff]  ;;  %v2052_v36 = vld [vmem:[%s2968_s2 + $0x8] sm:$0xff]  }
   0x8   :  { %1744 = vrot.lane.b32.xlu1 %v1743_v10, %s2078_s10  ;;  %v1519_v23 = vld [vmem:[%s2965_s1 + $0x42] sm:$0xff]  ;;  %1714 = vmatpush3.bf16.msra.mxu0 %v2048_v21  ;;  %v35_v35 = vrot.slane %v34_v33, 7  ;;  %v2227_v41 = vld [vmem:[%s2965_s1 + $0x50] sm:$0xff]  ;;  %v2057_v56 = vld [vmem:[%s2968_s2 + $0x78] sm:$0xff]  }
   0x9   :  { %1734 = vrot.lane.b32.xlu0 %v1733_v11, %s2078_s10  ;;  %1715 = vmatprep.subr.bf16.mxu0 %v2074_v3  ;;  %v2050_v30 = vld [vmem:[%s2968_s2] sm:$0xff]   ;;  %v1783_v31 = vpack.i.bf16 %v1519_v23, %v1634_v12  ;;  %v1793_v37 = vpack.i.bf16 %v1636_v34, %v1519_v23  ;;  %v2054_v43 = vld [vmem:[%s2968_s2 + $0x10] sm:$0xff]   ;;  %v2053_v45 = vld [vmem:[%s2968_s2 + $0x68] sm:$0xff]  }
   0xa   :  { %686 = vmatpush1.bf16.msra.mxu1 %v2050_v30  ;;  %v2218_v38 = vld [vmem:[%s2965_s1 + $0x40] sm:$0xff]  ;;  %v37_v39 = vsel %vm36_vm1, %v35_v35, %v33_v32  ;;  %v2246_v47 = vld [vmem:[%s2965_s1 + $0x51] sm:$0xff]  ;;  %v2060_v58 = vld [vmem:[%s2968_s2 + $0x28] sm:$0xff]  }
   0xb   :  { %687 = vmatprep.subr.bf16.mxu1 %v2076_v8  ;;  %v2051_v40 = vld [vmem:[%s2968_s2 + $0x60] sm:$0xff]   ;;  %v38_v42 = vpack.c.b16 %v37_v39, %v37_v39  ;;  %v1803_v44 = vpack.i.bf16 %v2227_v41, %v2218_v38  ;;  %v1798_v46 = vpack.i.bf16 %v2218_v38, %v2157_v15  ;;  %v2055_v51 = vld [vmem:[%s2968_s2 + $0x70] sm:$0xff]   ;;  %v1808_v52 = vpack.i.bf16 %v2246_v47, %v2178_v20  ;;  %v2061_v2 = vld [vmem:[%s2968_s2 + $0x88] sm:$0xff]  }
   0xc   :  { %1754 = vrot.lane.b32.xlu1 %v1753_v13, %s2078_s10  ;;  %1716 = vmatpush3.bf16.msra.mxu0 %v2049_v24  ;;  %v2251_v48 = vld [vmem:[%s2965_s1 + $0x61] sm:$0xff]  ;;  %v1638_v57 = vld [vmem:[%s2965_s1 + $0x72] sm:$0xff] }
   0xd   :  { %1749 = vrot.lane.b32.xlu0 %v1743_v10, %s2077_s9  ;;  %1359 = vmatprep.subr.bf16.mxu0 %v2076_v8  ;;  %v1813_v50 = vpack.i.bf16 %v2251_v48, %v2246_v47  ;;  %v1521_v53 = vld [vmem:[%s2965_s1 + $0x62] sm:$0xff]  ;;  %v2301_v62 = vld [vmem:[%s2965_s1 + $0x70] sm:$0xff]  ;;  %v2064_v6 = vld [vmem:[%s2968_s2 + $0x38] sm:$0xff]  }
   0xe   :  { %688 = vmatpush1.bf16.msra.mxu1 %v2052_v36  ;;  %v2058_v54 = vld [vmem:[%s2968_s2 + $0x20] sm:$0xff]   ;;  %v1823_v55 = vpack.i.bf16 %v1521_v53, %v1636_v34  ;;  %v1833_v60 = vpack.i.bf16 %v1638_v57, %v1521_v53  ;;  %v2062_v63 = vld [vmem:[%s2968_s2 + $0x30] sm:$0xff]   ;;  %v2069_v29 = vld [vmem:[%s2968_s2 + $0xa8] sm:$0xff]  }
   0xf   :  { %1718 = vmatmul.mubr.msk.bf16.vlgmr.msra.gmra.mrb[0].mxu0 %vm51_vm2, %v38_v42  ;;  %689 = vmatprep.subr.bf16.mxu1 %v2076_v8  ;;  %v2290_v59 = vld [vmem:[%s2965_s1 + $0x60] sm:$0xff]  ;;  %v2310_v0 = vld [vmem:[%s2965_s1 + $0x71] sm:$0xff] }
  0x10   :  { %1764 = vrot.lane.b32.xlu1 %v1763_v17, %s2079_s25  ;;  %1360 = vmatpush1.bf16.msra.mxu0 %v2051_v40  ;;  %v2059_v61 = vld [vmem:[%s2968_s2 + $0x80] sm:$0xff]   ;;  %v1843_v1 = vpack.i.bf16 %v2301_v62, %v2290_v59  ;;  %v1838_v3 = vpack.i.bf16 %v2290_v59, %v2227_v41  ;;  %v2063_v10 = vld [vmem:[%s2968_s2 + $0x90] sm:$0xff]   ;;  %v1848_v11 = vpack.i.bf16 %v2310_v0, %v2251_v48  ;;  %v2072_v34 = vld [vmem:[%s2968_s2 + $0x58] sm:$0xff]  }
  0x11   :  { %1759 = vrot.lane.b32.xlu0 %v1758_v18, %s2079_s25  ;;  %1361 = vmatprep.subr.bf16.mxu0 %v2076_v8  ;;  %v2325_v4 = vld [vmem:[%s2965_s1 + $0x81] sm:$0xff]  ;;  %v2065_v18 = vld [vmem:[%s2968_s2 + $0x98] sm:$0xff]   ;;  %v2070_v27 = vld [vmem:[%s2968_s2 + $0x50] sm:$0xff]  }
  0x12   :  { %690 = vmatpush1.bf16.msra.mxu1 %v2054_v43  ;;  %v1853_v9 = vpack.i.bf16 %v2325_v4, %v2310_v0  ;;  %v1523_v12 = vld [vmem:[%s2965_s1 + $0x82] sm:$0xff]  ;;  %v1640_v21 = vld [vmem:[%s2965_s1 + $0x92] sm:$0xff] }
  0x13   :  { %691 = vmatprep.subr.bf16.mxu1 %v2076_v8  ;;  %v1863_v17 = vpack.i.bf16 %v1523_v12, %v1638_v57  ;;  %v1873_v23 = vpack.i.bf16 %v1640_v21, %v1523_v12  ;;  %v2067_v24 = vld [vmem:[%s2968_s2 + $0xa0] sm:$0xff]   ;;  %v2071_v36 = vld [vmem:[%s2968_s2 + $0xb0] sm:$0xff]  }
  0x14   :  { %1774 = vrot.lane.b32.xlu1 %v1773_v22, %s2078_s10  ;;  %1362 = vmatpush1.bf16.msra.mxu0 %v2053_v45  ;;  %v2068_v22 = vld [vmem:[%s2968_s2 + $0x48] sm:$0xff]   ;;  %v2370_v25 = vld [vmem:[%s2965_s1 + $0x80] sm:$0xff]  ;;  %v1524_v39 = vld [vmem:[%s2965_s1 + $0xb2] sm:$0xff] }
  0x15   :  { %1769 = vrot.lane.b32.xlu0 %v1768_v26, %s2078_s10  ;;  %1363 = vmatprep.subr.bf16.mxu0 %v2076_v8  ;;  %v1608_v26 = vld [vmem:[%s2965_s1 + $0x90] sm:$0xff]  ;;  %v1878_v30 = vpack.i.bf16 %v2370_v25, %v2301_v62  ;;  %v1578_v32 = vld [vmem:[%s2965_s1 + $0xc1] sm:$0xff] }
  0x16   :  { %692 = vmatpush1.bf16.msra.mxu1 %v2056_v49  ;;  %v1883_v28 = vpack.i.bf16 %v1608_v26, %v2370_v25  ;;  %v147_v33 = vld [vmem:[%s2965_s1 + $0xa1] sm:$0xff] }
  0x17   :  { %693 = vmatprep.subr.bf16.mxu1 %v2076_v8  ;;  %v1525_v40 = vld [vmem:[%s2965_s1 + $0xc2] sm:$0xff] }
  0x18   :  { %1784 = vrot.lane.b32.xlu1 %v1783_v31, %s2078_s10  ;;  %1364 = vmatpush1.bf16.msra.mxu0 %v2055_v51  ;;  %v163_v42 = vld [vmem:[%s2965_s1 + $0xa2] sm:$0xff]  ;;  %v1903_v43 = vpack.i.bf16 %v1525_v40, %v1524_v39  ;;  %v1610_v51 = vld [vmem:[%s2965_s1 + $0xd0] sm:$0xff] }
  0x19   :  { %1779 = vrot.lane.b32.xlu0 %v1753_v13, %s2077_s9  ;;  %1365 = vmatprep.subr.bf16.mxu0 %v2076_v8  ;;  %v2066_v13 = vld [vmem:[%s2968_s2 + $0x40] sm:$0xff]   ;;  %v1898_v45 = vpack.i.bf16 %v1524_v39, %v163_v42  ;;  %v1616_v39 = vld [vmem:[%s2965_s1 + $0x130] sm:$0xff] }
  0x1a   :  { %694 = vmatpush1.bf16.msra.mxu1 %v2058_v54  ;;  %v2449_v54 = vld [vmem:[%s2965_s1 + $0xd1] sm:$0xff] }
  0x1b   :  { %695 = vmatprep.subr.bf16.mxu1 %v2076_v8  ;;  %v1928_v57 = vpack.i.bf16 %v2449_v54, %v1578_v32 }
  0x1c   :  { %1794 = vrot.lane.b32.xlu1 %v1793_v37, %s2078_s10  ;;  %1366 = vmatpush1.bf16.msra.mxu0 %v2057_v56 }
  0x1d   :  { %1789 = vrot.lane.b32.xlu0 %v1783_v31, %s2077_s9  ;;  %1367 = vmatprep.subr.bf16.mxu0 %v2076_v8  ;;  %v1577_v31 = vld [vmem:[%s2965_s1 + $0xb1] sm:$0xff] }
  0x1e   :  { %696 = vmatpush1.bf16.msra.mxu1 %v2060_v58  ;;  %v1893_v35 = vpack.i.bf16 %v1578_v32, %v1577_v31  ;;  %v1527_v58 = vld [vmem:[%s2965_s1 + $0xe2] sm:$0xff] }
  0x1f   :  { %697 = vmatprep.subr.bf16.mxu1 %v2076_v8 }
  0x20   :  { %1804 = vrot.lane.b32.xlu1 %v1803_v44, %s2079_s25  ;;  %1368 = vmatpush1.bf16.msra.mxu0 %v2059_v61  ;;  %v2073_v44 = vld [vmem:[%s2968_s2 + $0xb8] sm:$0xff]  }
  0x21   :  { %1799 = vrot.lane.b32.xlu0 %v1798_v46, %s2079_s25  ;;  %1369 = vmatprep.subr.bf16.mxu0 %v2076_v8  ;;  %v1642_v46 = vld [vmem:[%s2965_s1 + $0xd2] sm:$0xff] }
  0x22   :  { %698 = vmatpush1.bf16.msra.mxu1 %v2062_v63  ;;  %v1913_v49 = vpack.i.bf16 %v1642_v46, %v1525_v40  ;;  %v1644_v61 = vld [vmem:[%s2965_s1 + $0xf2] sm:$0xff] }
  0x23   :  { %699 = vmatprep.subr.bf16.mxu1 %v2076_v8  ;;  %v1953_v63 = vpack.i.bf16 %v1644_v61, %v1527_v58 }
  0x24   :  { %1814 = vrot.lane.b32.xlu1 %v1813_v50, %s2078_s10  ;;  %1370 = vmatpush1.bf16.msra.mxu0 %v2061_v2  ;;  %v2431_v50 = vld [vmem:[%s2965_s1 + $0xc0] sm:$0xff]  ;;  %v2476_v2 = vld [vmem:[%s2965_s1 + $0xf0] sm:$0xff] }
  0x25   :  { %1809 = vrot.lane.b32.xlu0 %v1808_v52, %s2078_s10  ;;  %1371 = vmatprep.subr.bf16.mxu0 %v2076_v8  ;;  %v2439_v52 = vld [vmem:[%s2965_s1 + $0xb0] sm:$0xff] }
  0x26   :  { %700 = vmatpush1.bf16.msra.mxu1 %v2064_v6  ;;  %v1918_v53 = vpack.i.bf16 %v2431_v50, %v2439_v52 }
  0x27   :  { %701 = vmatprep.subr.bf16.mxu1 %v2076_v8 }
  0x28   :  { %1824 = vrot.lane.b32.xlu1 %v1823_v55, %s2078_s10  ;;  %1372 = vmatpush1.bf16.msra.mxu0 %v2063_v10  ;;  %v2491_v10 = vld [vmem:[%s2965_s1 + $0x101] sm:$0xff] }
  0x29   :  { %1819 = vrot.lane.b32.xlu0 %v1793_v37, %s2077_s9  ;;  %1373 = vmatprep.subr.bf16.mxu0 %v2076_v8  ;;  %v1888_v37 = vpack.i.bf16 %v1577_v31, %v147_v33  ;;  %v1531_v31 = vld [vmem:[%s2965_s1 + $0x122] sm:$0xff]  ;;  %v1648_v33 = vld [vmem:[%s2965_s1 + $0x132] sm:$0xff] }
  0x2a   :  { %702 = vmatpush1.bf16.msra.mxu1 %v2066_v13  ;;  %v1529_v13 = vld [vmem:[%s2965_s1 + $0x102] sm:$0xff] }
  0x2b   :  { %703 = vmatprep.subr.bf16.mxu1 %v2076_v8 }
  0x2c   :  { %1834 = vrot.lane.b32.xlu1 %v1833_v60, %s2078_s10  ;;  %1374 = vmatpush1.bf16.msra.mxu0 %v2065_v18  ;;  %v1646_v18 = vld [vmem:[%s2965_s1 + $0x112] sm:$0xff] }
  0x2d   :  { %1829 = vrot.lane.b32.xlu0 %v1823_v55, %s2077_s9  ;;  %1375 = vmatprep.subr.bf16.mxu0 %v2076_v8  ;;  %v1580_v55 = vld [vmem:[%s2965_s1 + $0xe1] sm:$0xff]  ;;  %v1993_v21 = vpack.i.bf16 %v1646_v18, %v1529_v13  ;;  %v2023_v32 = vpack.i.bf16 %v1531_v31, %v1646_v18 }
  0x2e   :  { %704 = vmatpush1.bf16.msra.mxu1 %v2068_v22  ;;  %v1933_v56 = vpack.i.bf16 %v1580_v55, %v2449_v54  ;;  %v2511_v22 = vld [vmem:[%s2965_s1 + $0x100] sm:$0xff] }
  0x2f   :  { %705 = vmatprep.subr.bf16.mxu1 %v2076_v8  ;;  %v1998_v26 = vpack.i.bf16 %v2511_v22, %v2476_v2 }
  0x30   :  { %1844 = vrot.lane.b32.xlu1 %v1843_v1, %s2079_s25  ;;  %1376 = vmatpush1.bf16.msra.mxu0 %v2067_v24  ;;  %v2471_v1 = vld [vmem:[%s2965_s1 + $0xe0] sm:$0xff] }
  0x31   :  { %1839 = vrot.lane.b32.xlu0 %v1838_v3, %s2079_s25  ;;  %1377 = vmatprep.subr.bf16.mxu0 %v2076_v8  ;;  %v1963_v3 = vpack.i.bf16 %v2476_v2, %v2471_v1  ;;  %v1958_v6 = vpack.i.bf16 %v2471_v1, %v1610_v51 }
  0x32   :  { %706 = vmatpush1.bf16.msra.mxu1 %v2070_v27  ;;  %v2527_v27 = vld [vmem:[%s2965_s1 + $0x111] sm:$0xff] }
  0x33   :  { %707 = vmatprep.subr.bf16.mxu1 %v2076_v8 }
  0x34   :  { %1854 = vrot.lane.b32.xlu1 %v1853_v9, %s2078_s10  ;;  %1378 = vmatpush1.bf16.msra.mxu0 %v2069_v29  ;;  %v2486_v9 = vld [vmem:[%s2965_s1 + $0xf1] sm:$0xff] }
  0x35   :  { %1849 = vrot.lane.b32.xlu0 %v1848_v11, %s2078_s10  ;;  %1379 = vmatprep.subr.bf16.mxu0 %v2076_v8  ;;  %v1973_v11 = vpack.i.bf16 %v2491_v10, %v2486_v9  ;;  %v1968_v12 = vpack.i.bf16 %v2486_v9, %v1580_v55 }
  0x36   :  { %708 = vmatpush1.bf16.msra.mxu1 %v2072_v34 }
  0x38   :  { %1864 = vrot.lane.b32.xlu1 %v1863_v17, %s2078_s10  ;;  %1380 = vmatpush1.bf16.msra.mxu0 %v2071_v36  ;;  %v2033_v36 = vpack.i.bf16 %v1648_v33, %v1531_v31 }
  0x39   :  { %1859 = vrot.lane.b32.xlu0 %v1833_v60, %s2077_s9  ;;  %1381 = vmatprep.subr.bf16.mxu0 %v2076_v8  ;;  %v1923_v8 = vpack.i.bf16 %v1610_v51, %v2431_v50  ;;  %v1943_v60 = vpack.i.bf16 %v1527_v58, %v1642_v46 }
  0x3c   :  { %1874 = vrot.lane.b32.xlu1 %v1873_v23, %s2078_s10  ;;  %1382 = vmatpush1.bf16.msra.mxu0 %v2073_v44  ;;  %v2516_v23 = vld [vmem:[%s2965_s1 + $0x110] sm:$0xff] }
  0x3d   :  { %1869 = vrot.lane.b32.xlu0 %v1863_v17, %s2077_s9  ;;  %v1983_v17 = vpack.i.bf16 %v1529_v13, %v1644_v61  ;;  %v2003_v24 = vpack.i.bf16 %v2516_v23, %v2511_v22 }
  0x40   :  { %1884 = vrot.lane.b32.xlu1 %v1883_v28, %s2079_s25  ;;  %v2532_v28 = vld [vmem:[%s2965_s1 + $0x121] sm:$0xff] }
  0x41   :  { %1879 = vrot.lane.b32.xlu0 %v1878_v30, %s2079_s25  ;;  %v2013_v29 = vpack.i.bf16 %v2532_v28, %v2527_v27  ;;  %v2008_v30 = vpack.i.bf16 %v2527_v27, %v2491_v10 }
  0x44   :  { %1894 = vrot.lane.b32.xlu1 %v1893_v35, %s2078_s10 }
  0x45   :  { %1889 = vrot.lane.b32.xlu0 %v1888_v37, %s2078_s10  ;;  %v2553_v37 = vld [vmem:[%s2965_s1 + $0x120] sm:$0xff] }
  0x46   :  { %v2038_v51 = vpack.i.bf16 %v2553_v37, %v2516_v23 }
  0x48   :  { %1904 = vrot.lane.b32.xlu1 %v1903_v43, %s2078_s10 }
  0x49   :  { %1899 = vrot.lane.b32.xlu0 %v1898_v45, %s2077_s9  ;;  %v2043_v45 = vpack.i.bf16 %v1616_v39, %v2553_v37 }
  0x4c   :  { %1914 = vrot.lane.b32.xlu1 %v1913_v49, %s2078_s10 }
  0x4d   :  { %1909 = vrot.lane.b32.xlu0 %v1903_v43, %s2077_s9 }
  0x50   :  { %1924 = vrot.lane.b32.xlu1 %v1923_v8, %s2079_s25 }
  0x51   :  { %1919 = vrot.lane.b32.xlu0 %v1918_v53, %s2079_s25 }
  0x54   :  { %1934 = vrot.lane.b32.xlu1 %v1933_v56, %s2078_s10 }
  0x55   :  { %1929 = vrot.lane.b32.xlu0 %v1928_v57, %s2078_s10  ;;  %v123_v57 = vld [vmem:[%s2965_s1] sm:$0xff] }
  0x58   :  { %1944 = vrot.lane.b32.xlu1 %v1943_v60, %s2078_s10 }
  0x59   :  { %1939 = vrot.lane.b32.xlu0 %v1913_v49, %s2077_s9 }
  0x5c   :  { %1954 = vrot.lane.b32.xlu1 %v1953_v63, %s2078_s10 }
  0x5d   :  { %1949 = vrot.lane.b32.xlu0 %v1943_v60, %s2077_s9 }
  0x60   :  { %1964 = vrot.lane.b32.xlu1 %v1963_v3, %s2079_s25 }
  0x61   :  { %1959 = vrot.lane.b32.xlu0 %v1958_v6, %s2079_s25 }
  0x64   :  { %1974 = vrot.lane.b32.xlu1 %v1973_v11, %s2078_s10 }
  0x65   :  { %1969 = vrot.lane.b32.xlu0 %v1968_v12, %s2078_s10 }
  0x68   :  { %1984 = vrot.lane.b32.xlu1 %v1983_v17, %s2078_s10 }
  0x69   :  { %1979 = vrot.lane.b32.xlu0 %v1953_v63, %s2077_s9 }
  0x6c   :  { %1994 = vrot.lane.b32.xlu1 %v1993_v21, %s2078_s10 }
  0x6d   :  { %1989 = vrot.lane.b32.xlu0 %v1983_v17, %s2077_s9 }
  0x70   :  { %2004 = vrot.lane.b32.xlu1 %v2003_v24, %s2079_s25 }
  0x71   :  { %1999 = vrot.lane.b32.xlu0 %v1998_v26, %s2079_s25 }
  0x74   :  { %2014 = vrot.lane.b32.xlu1 %v2013_v29, %s2078_s10 }
  0x75   :  { %2009 = vrot.lane.b32.xlu0 %v2008_v30, %s2078_s10 }
  0x76   :  { %v1740_v34 = vpop.permute.xlu1 %1739 }
  0x77   :  { %v1730_v35 = vpop.permute.xlu0 %1729  ;;  %v1742_v11 = vunpack.i.h.bf16 %v1740_v34  ;;  %v1741_v12 = vunpack.i.l.bf16 %v1740_v34 }
  0x78   :  { %2024 = vrot.lane.b32.xlu1 %v2023_v32, %s2078_s10  ;;  %v1732_v8 = vunpack.i.h.bf16 %v1730_v35  ;;  %v1731_v53 = vunpack.i.l.bf16 %v1730_v35 }
  0x79   :  { %2019 = vrot.lane.b32.xlu0 %v1993_v21, %s2077_s9 }
  0x7a   :  { %v1745_v40 = vpop.permute.xlu1 %1744  ;;  %v476_v18 = vsel %vm51_vm2, %v123_v57, %v1731_v53  ;;  %v477_v21 = vsel %vm51_vm2, %v2162_v16, %v1732_v8 }
  0x7b   :  { %v1747_v42 = vunpack.i.h.bf16 %v1745_v40  ;;  %v1746_v43 = vunpack.i.l.bf16 %v1745_v40  ;;  %v1735_v44 = vpop.permute.xlu0 %1734 }
  0x7c   :  { %2034 = vrot.lane.b32.xlu1 %v2033_v36, %s2078_s10  ;;  %v1737_v58 = vunpack.i.h.bf16 %v1735_v44  ;;  %v1736_v60 = vunpack.i.l.bf16 %v1735_v44 }
  0x7d   :  { %2029 = vrot.lane.b32.xlu0 %v2023_v32, %s2077_s9  ;;  %v526_v46 = vsel %vm51_vm2, %v2128_v5, %v1746_v43  ;;  %v527_v49 = vsel %vm51_vm2, %v2136_v7, %v1747_v42  ;;  %v493_v42 = vsel %vm492_vm3, %v476_v18, %v1741_v12  ;;  %v494_v43 = vsel %vm492_vm3, %v477_v21, %v1742_v11 }
  0x7e   :  { %v1755_v55 = vpop.permute.xlu1 %1754  ;;  %v543_v56 = vpack.c.bf16 %v527_v49, %v526_v46  ;;  %v1152_v29 = vsel %vm51_vm2, %v2152_v14, %v1737_v58  ;;  %v1151_v30 = vsel %vm51_vm2, %v2162_v16, %v1736_v60 }
  0x7f   :  { %v1757_v61 = vunpack.i.h.bf16 %v1755_v55  ;;  %v1756_v63 = vunpack.i.l.bf16 %v1755_v55  ;;  %v1750_v5 = vpop.permute.xlu0 %1749 }
  0x80   :  { %v1752_v3 = vunpack.i.h.bf16 %v1750_v5  ;;  %v1751_v6 = vunpack.i.l.bf16 %v1750_v5  ;;  %2044 = vrot.lane.b32.xlu1 %v2043_v45, %s2079_s25  ;;  %1545 = vmatprep.mubr.msk.bf16.mxu1 %vm492_vm3, %v543_v56 }
  0x81   :  { %v1200_v13 = vsel %vm51_vm2, %v2173_v19, %v1757_v61  ;;  %v1199_v17 = vsel %vm51_vm2, %v2136_v7, %v1756_v63  ;;  %2039 = vrot.lane.b32.xlu0 %v2038_v51, %s2079_s25 }
  0x82   :  { %v1216_v24 = vpack.c.bf16 %v1200_v13, %v1199_v17  ;;  %v1765_v26 = vpop.permute.xlu1 %1764  ;;  %v1167_v7 = vsel %vm492_vm3, %v1151_v30, %v1751_v6  ;;  %v1168_v34 = vsel %vm492_vm3, %v1152_v29, %v1752_v3 }
  0x83   :  { %v1767_v31 = vunpack.i.h.bf16 %v1765_v26  ;;  %v1766_v32 = vunpack.i.l.bf16 %v1765_v26  ;;  %v1760_v33 = vpop.permute.xlu0 %1759 }
  0x84   :  { %v1762_v35 = vunpack.i.h.bf16 %v1760_v33  ;;  %v1761_v36 = vunpack.i.l.bf16 %v1760_v33  ;;  %1686 = vmatprep.mubr.msk.bf16.mxu0 %vm492_vm3, %v1216_v24 }
  0x85   :  { %v1183_v39 = vsel %vm509_vm4, %v1167_v7, %v1766_v32  ;;  %v1184_v40 = vsel %vm509_vm4, %v1168_v34, %v1767_v31 }
  0x86   :  { %v1215_v16 = vpack.c.bf16 %v1184_v40, %v1183_v39  ;;  %v1775_v44 = vpop.permute.xlu1 %1774  ;;  %v510_v45 = vsel %vm509_vm4, %v493_v42, %v1761_v36  ;;  %v511_v46 = vsel %vm509_vm4, %v494_v43, %v1762_v35 }
  0x87   :  { %v1770_v49 = vpop.permute.xlu0 %1769  ;;  %v542_v51 = vpack.c.bf16 %v511_v46, %v510_v45  ;;  %v1777_v60 = vunpack.i.h.bf16 %v1775_v44  ;;  %v1776_v61 = vunpack.i.l.bf16 %v1775_v44 }
  0x88   :  { %1392 = vmatmul.mubr.bf16.vlgmr.msra.gmra.mrb[4].mxu0 %v1215_v16  ;;  %v1772_v3 = vunpack.i.h.bf16 %v1770_v49  ;;  %v1771_v6 = vunpack.i.l.bf16 %v1770_v49 }
  0x89   :  { %718 = vmatmul.mubr.bf16.vlgmr.msra.gmra.mrb[0].mxu1 %v542_v51  ;;  %v1154_v29 = vsel %vm51_vm2, %v2218_v38, %v1777_v60  ;;  %v1153_v30 = vsel %vm51_vm2, %v2157_v15, %v1776_v61 }
  0x8a   :  { %v1785_v8 = vpop.permute.xlu1 %1784  ;;  %v478_v33 = vsel %vm51_vm2, %v2152_v14, %v1771_v6  ;;  %v479_v7 = vsel %vm51_vm2, %v2157_v15, %v1772_v3 }
  0x8b   :  { %v1787_v53 = vunpack.i.h.bf16 %v1785_v8  ;;  %v1786_v55 = vunpack.i.l.bf16 %v1785_v8  ;;  %v1780_v56 = vpop.permute.xlu0 %1779 }
  0x8c   :  { %v1782_v21 = vunpack.i.h.bf16 %v1780_v56  ;;  %v1781_v24 = vunpack.i.l.bf16 %v1780_v56 }
  0x8d   :  { %v529_v57 = vsel %vm51_vm2, %v2178_v20, %v1787_v53  ;;  %v528_v58 = vsel %vm51_vm2, %v2173_v19, %v1786_v55 }
  0x8e   :  { %v545_v63 = vpack.c.bf16 %v529_v57, %v528_v58  ;;  %v1795_v5 = vpop.permute.xlu1 %1794  ;;  %v495_v43 = vsel %vm492_vm3, %v478_v33, %v1781_v24  ;;  %v496_v16 = vsel %vm492_vm3, %v479_v7, %v1782_v21 }
  0x8f   :  { %v1797_v11 = vunpack.i.h.bf16 %v1795_v5  ;;  %v1796_v12 = vunpack.i.l.bf16 %v1795_v5  ;;  %v1790_v13 = vpop.permute.xlu0 %1789 }
  0x90   :  { %v1792_v17 = vunpack.i.h.bf16 %v1790_v13  ;;  %v1791_v18 = vunpack.i.l.bf16 %v1790_v13  ;;  %1546 = vmatprep.mubr.msk.bf16.mxu1 %vm492_vm3, %v545_v63 }
  0x91   :  { %v1202_v26 = vsel %vm51_vm2, %v2246_v47, %v1797_v11  ;;  %v1201_v19 = vsel %vm51_vm2, %v2178_v20, %v1796_v12 }
  0x92   :  { %v1218_v31 = vpack.c.bf16 %v1202_v26, %v1201_v19  ;;  %v1805_v32 = vpop.permute.xlu1 %1804  ;;  %v1170_v39 = vsel %vm492_vm3, %v1154_v29, %v1792_v17  ;;  %v1169_v20 = vsel %vm492_vm3, %v1153_v30, %v1791_v18 }
  0x93   :  { %v1807_v34 = vunpack.i.h.bf16 %v1805_v32  ;;  %v1806_v35 = vunpack.i.l.bf16 %v1805_v32  ;;  %v1800_v36 = vpop.permute.xlu0 %1799 }
  0x94   :  { %v1802_v40 = vunpack.i.h.bf16 %v1800_v36  ;;  %v1801_v42 = vunpack.i.l.bf16 %v1800_v36  ;;  %1687 = vmatprep.mubr.msk.bf16.mxu0 %vm492_vm3, %v1218_v31 }
  0x95   :  { %v1185_v14 = vsel %vm509_vm4, %v1169_v20, %v1806_v35  ;;  %v1186_v44 = vsel %vm509_vm4, %v1170_v39, %v1807_v34 }
  0x96   :  { %v1815_v15 = vpop.permute.xlu1 %1814  ;;  %v512_v45 = vsel %vm509_vm4, %v495_v43, %v1801_v42  ;;  %v513_v46 = vsel %vm509_vm4, %v496_v16, %v1802_v40  ;;  %v1217_v49 = vpack.c.bf16 %v1186_v44, %v1185_v14 }
  0x97   :  { %v1810_v51 = vpop.permute.xlu0 %1809  ;;  %v544_v8 = vpack.c.bf16 %v513_v46, %v512_v45  ;;  %v1817_v61 = vunpack.i.h.bf16 %v1815_v15  ;;  %v1816_v63 = vunpack.i.l.bf16 %v1815_v15 }
  0x98   :  { %1400 = vmatmul.mubr.bf16.gmra.mrb[8].mxu0 %v1217_v49  ;;  %v1812_v6 = vunpack.i.h.bf16 %v1810_v51  ;;  %v1811_v11 = vunpack.i.l.bf16 %v1810_v51 }
  0x99   :  { %726 = vmatmul.mubr.bf16.gmra.mrb[4].mxu1 %v544_v8  ;;  %v1156_v29 = vsel %vm51_vm2, %v2290_v59, %v1817_v61  ;;  %v1155_v30 = vsel %vm51_vm2, %v2227_v41, %v1816_v63  ;;  %v1624_v61 = vld [vmem:[%s2965_s1 + $0x91] sm:$0xff] }
  0x9a   :  { %v1825_v53 = vpop.permute.xlu1 %1824  ;;  %v480_v33 = vsel %vm51_vm2, %v2218_v38, %v1811_v11  ;;  %v481_v7 = vsel %vm51_vm2, %v2227_v41, %v1812_v6 }
  0x9b   :  { %v1827_v55 = vunpack.i.h.bf16 %v1825_v53  ;;  %v1826_v56 = vunpack.i.l.bf16 %v1825_v53  ;;  %v1820_v57 = vpop.permute.xlu0 %1819 }
  0x9c   :  { %v1822_v24 = vunpack.i.h.bf16 %v1820_v57  ;;  %v1821_v26 = vunpack.i.l.bf16 %v1820_v57 }
  0x9d   :  { %v531_v58 = vsel %vm51_vm2, %v2251_v48, %v1827_v55  ;;  %v530_v60 = vsel %vm51_vm2, %v2246_v47, %v1826_v56 }
  0x9e   :  { %v547_v5 = vpack.c.bf16 %v531_v58, %v530_v60  ;;  %v1835_v3 = vpop.permute.xlu1 %1834  ;;  %v497_v42 = vsel %vm492_vm3, %v480_v33, %v1821_v26  ;;  %v498_v43 = vsel %vm492_vm3, %v481_v7, %v1822_v24 }
  0x9f   :  { %v1837_v12 = vunpack.i.h.bf16 %v1835_v3  ;;  %v1836_v13 = vunpack.i.l.bf16 %v1835_v3  ;;  %v1830_v17 = vpop.permute.xlu0 %1829 }
  0xa0   :  { %v1832_v18 = vunpack.i.h.bf16 %v1830_v17  ;;  %v1831_v21 = vunpack.i.l.bf16 %v1830_v17  ;;  %1547 = vmatprep.mubr.msk.bf16.mxu1 %vm492_vm3, %v547_v5 }
  0xa1   :  { %v1204_v19 = vsel %vm51_vm2, %v2310_v0, %v1837_v12  ;;  %v1203_v47 = vsel %vm51_vm2, %v2251_v48, %v1836_v13 }
  0xa2   :  { %v1220_v31 = vpack.c.bf16 %v1204_v19, %v1203_v47  ;;  %v1845_v32 = vpop.permute.xlu1 %1844  ;;  %v1172_v39 = vsel %vm492_vm3, %v1156_v29, %v1832_v18  ;;  %v1171_v48 = vsel %vm492_vm3, %v1155_v30, %v1831_v21 }
  0xa3   :  { %v1847_v34 = vunpack.i.h.bf16 %v1845_v32  ;;  %v1846_v35 = vunpack.i.l.bf16 %v1845_v32  ;;  %v1840_v36 = vpop.permute.xlu0 %1839 }
  0xa4   :  { %v1842_v20 = vunpack.i.h.bf16 %v1840_v36  ;;  %v1841_v40 = vunpack.i.l.bf16 %v1840_v36  ;;  %1688 = vmatprep.mubr.msk.bf16.mxu0 %vm492_vm3, %v1220_v31 }
  0xa5   :  { %v1187_v38 = vsel %vm509_vm4, %v1171_v48, %v1846_v35  ;;  %v1188_v16 = vsel %vm509_vm4, %v1172_v39, %v1847_v34 }
  0xa6   :  { %v1855_v41 = vpop.permute.xlu1 %1854  ;;  %v514_v14 = vsel %vm509_vm4, %v497_v42, %v1841_v40  ;;  %v515_v44 = vsel %vm509_vm4, %v498_v43, %v1842_v20  ;;  %v1219_v15 = vpack.c.bf16 %v1188_v16, %v1187_v38  ;;  %v1508_v16 = vld [vmem:[%s2965_s1 + $0xb1] sm:$0xff] }
  0xa7   :  { %v1850_v45 = vpop.permute.xlu0 %1849  ;;  %v546_v46 = vpack.c.bf16 %v515_v44, %v514_v14  ;;  %v1857_v57 = vunpack.i.h.bf16 %v1855_v41  ;;  %v1856_v58 = vunpack.i.l.bf16 %v1855_v41  ;;  %v1509_v41 = vld [vmem:[%s2965_s1 + $0xc1] sm:$0xff] }
  0xa8   :  { %1408 = vmatmul.mubr.bf16.gmra.mrb[12].mxu0 %v1219_v15  ;;  %v1852_v5 = vunpack.i.h.bf16 %v1850_v45  ;;  %v1851_v3 = vunpack.i.l.bf16 %v1850_v45 }
  0xa9   :  { %734 = vmatmul.mubr.bf16.gmra.mrb[8].mxu1 %v546_v46  ;;  %v1158_v26 = vsel %vm51_vm2, %v2370_v25, %v1857_v57  ;;  %v1157_v19 = vsel %vm51_vm2, %v2301_v62, %v1856_v58 }
  0xaa   :  { %v1865_v49 = vpop.permute.xlu1 %1864  ;;  %v482_v30 = vsel %vm51_vm2, %v2290_v59, %v1851_v3  ;;  %v483_v31 = vsel %vm51_vm2, %v2301_v62, %v1852_v5 }
  0xab   :  { %v1867_v51 = vunpack.i.h.bf16 %v1865_v49  ;;  %v1866_v8 = vunpack.i.l.bf16 %v1865_v49  ;;  %v1860_v53 = vpop.permute.xlu0 %1859 }
  0xac   :  { %v1862_v18 = vunpack.i.h.bf16 %v1860_v53  ;;  %v1861_v21 = vunpack.i.l.bf16 %v1860_v53 }
  0xad   :  { %v533_v55 = vsel %vm51_vm2, %v2325_v4, %v1867_v51  ;;  %v532_v56 = vsel %vm51_vm2, %v2310_v0, %v1866_v8 }
  0xae   :  { %v549_v60 = vpack.c.bf16 %v533_v55, %v532_v56  ;;  %v1875_v63 = vpop.permute.xlu1 %1874  ;;  %v499_v36 = vsel %vm492_vm3, %v482_v30, %v1861_v21  ;;  %v500_v39 = vsel %vm492_vm3, %v483_v31, %v1862_v18 }
  0xaf   :  { %v1877_v6 = vunpack.i.h.bf16 %v1875_v63  ;;  %v1876_v11 = vunpack.i.l.bf16 %v1875_v63  ;;  %v1870_v12 = vpop.permute.xlu0 %1869  ;;  %v131_v63 = vld [vmem:[%s2965_s1 + $0xa0] sm:$0xff] }
  0xb0   :  { %v1872_v13 = vunpack.i.h.bf16 %v1870_v12  ;;  %v1871_v17 = vunpack.i.l.bf16 %v1870_v12  ;;  %1548 = vmatprep.mubr.msk.bf16.mxu1 %vm492_vm3, %v549_v60 }
  0xb1   :  { %v1206_v0 = vsel %vm51_vm2, %v1624_v61, %v1877_v6  ;;  %v1205_v24 = vsel %vm51_vm2, %v2325_v4, %v1876_v11 }
  0xb2   :  { %v1222_v47 = vpack.c.bf16 %v1206_v0, %v1205_v24  ;;  %v1885_v29 = vpop.permute.xlu1 %1884  ;;  %v1174_v34 = vsel %vm492_vm3, %v1158_v26, %v1872_v13  ;;  %v1173_v4 = vsel %vm492_vm3, %v1157_v19, %v1871_v17 }
  0xb3   :  { %v1887_v32 = vunpack.i.h.bf16 %v1885_v29  ;;  %v1886_v33 = vunpack.i.l.bf16 %v1885_v29  ;;  %v1880_v7 = vpop.permute.xlu0 %1879 }
  0xb4   :  { %v1882_v35 = vunpack.i.h.bf16 %v1880_v7  ;;  %v1881_v25 = vunpack.i.l.bf16 %v1880_v7  ;;  %1689 = vmatprep.mubr.msk.bf16.mxu0 %vm492_vm3, %v1222_v47 }
  0xb5   :  { %v1189_v59 = vsel %vm509_vm4, %v1173_v4, %v1886_v33  ;;  %v1190_v48 = vsel %vm509_vm4, %v1174_v34, %v1887_v32 }
  0xb6   :  { %v1895_v62 = vpop.permute.xlu1 %1894  ;;  %v516_v20 = vsel %vm509_vm4, %v499_v36, %v1881_v25  ;;  %v517_v40 = vsel %vm509_vm4, %v500_v39, %v1882_v35  ;;  %v1221_v42 = vpack.c.bf16 %v1190_v48, %v1189_v59  ;;  %v1510_v59 = vld [vmem:[%s2965_s1 + $0xd1] sm:$0xff]  ;;  %v1511_v48 = vld [vmem:[%s2965_s1 + $0xe1] sm:$0xff] }
  0xb7   :  { %v1890_v43 = vpop.permute.xlu0 %1889  ;;  %v548_v38 = vpack.c.bf16 %v517_v40, %v516_v20  ;;  %v1897_v51 = vunpack.i.h.bf16 %v1895_v62  ;;  %v1896_v8 = vunpack.i.l.bf16 %v1895_v62 }
  0xb8   :  { %1416 = vmatmul.mubr.bf16.gmra.mrb[16].mxu0 %v1221_v42  ;;  %v1892_v56 = vunpack.i.h.bf16 %v1890_v43  ;;  %v1891_v57 = vunpack.i.l.bf16 %v1890_v43 }
  0xb9   :  { %742 = vmatmul.mubr.bf16.gmra.mrb[12].mxu1 %v548_v38  ;;  %v1160_v17 = vsel %vm51_vm2, %v2431_v50, %v1897_v51  ;;  %v1159_v18 = vsel %vm51_vm2, %v2439_v52, %v1896_v8 }
  0xba   :  { %v1905_v14 = vpop.permute.xlu1 %1904  ;;  %v484_v24 = vsel %vm51_vm2, %v131_v63, %v1891_v57  ;;  %v485_v26 = vsel %vm51_vm2, %v2439_v52, %v1892_v56 }
  0xbb   :  { %v1907_v44 = vunpack.i.h.bf16 %v1905_v14  ;;  %v1906_v15 = vunpack.i.l.bf16 %v1905_v14  ;;  %v1900_v45 = vpop.permute.xlu0 %1899 }
  0xbc   :  { %v1902_v6 = vunpack.i.h.bf16 %v1900_v45  ;;  %v1901_v11 = vunpack.i.l.bf16 %v1900_v45 }
  0xbd   :  { %v535_v46 = vsel %vm51_vm2, %v1509_v41, %v1907_v44  ;;  %v534_v49 = vsel %vm51_vm2, %v1508_v16, %v1906_v15  ;;  %v1563_v15 = vld [vmem:[%s2965_s1 + $0xd0] sm:$0xff] }
  0xbe   :  { %v551_v53 = vpack.c.bf16 %v535_v46, %v534_v49  ;;  %v1915_v55 = vpop.permute.xlu1 %1914  ;;  %v501_v50 = vsel %vm492_vm3, %v484_v24, %v1901_v11  ;;  %v502_v33 = vsel %vm492_vm3, %v485_v26, %v1902_v6 }
  0xbf   :  { %v1917_v58 = vunpack.i.h.bf16 %v1915_v55  ;;  %v1916_v60 = vunpack.i.l.bf16 %v1915_v55  ;;  %v1910_v61 = vpop.permute.xlu0 %1909 }
  0xc0   :  { %v1912_v5 = vunpack.i.h.bf16 %v1910_v61  ;;  %v1911_v3 = vunpack.i.l.bf16 %v1910_v61  ;;  %1549 = vmatprep.mubr.msk.bf16.mxu1 %vm492_vm3, %v551_v53  ;;  %v133_v53 = vld [vmem:[%s2965_s1 + $0xc0] sm:$0xff] }
  0xc1   :  { %v1208_v12 = vsel %vm51_vm2, %v2449_v54, %v1917_v58  ;;  %v1207_v13 = vsel %vm51_vm2, %v1509_v41, %v1916_v60 }
  0xc2   :  { %v1224_v21 = vpack.c.bf16 %v1208_v12, %v1207_v13  ;;  %v1925_v0 = vpop.permute.xlu1 %1924  ;;  %v1176_v54 = vsel %vm492_vm3, %v1160_v17, %v1912_v5  ;;  %v1175_v30 = vsel %vm492_vm3, %v1159_v18, %v1911_v3 }
  0xc3   :  { %v1927_v19 = vunpack.i.h.bf16 %v1925_v0  ;;  %v1926_v47 = vunpack.i.l.bf16 %v1925_v0  ;;  %v1920_v29 = vpop.permute.xlu0 %1919 }
  0xc4   :  { %v1922_v31 = vunpack.i.h.bf16 %v1920_v29  ;;  %v1921_v32 = vunpack.i.l.bf16 %v1920_v29  ;;  %1690 = vmatprep.mubr.msk.bf16.mxu0 %vm492_vm3, %v1224_v21 }
  0xc5   :  { %v1191_v7 = vsel %vm509_vm4, %v1175_v30, %v1926_v47  ;;  %v1192_v34 = vsel %vm509_vm4, %v1176_v54, %v1927_v19 }
  0xc6   :  { %v1935_v52 = vpop.permute.xlu1 %1934  ;;  %v518_v4 = vsel %vm509_vm4, %v501_v50, %v1921_v32  ;;  %v519_v35 = vsel %vm509_vm4, %v502_v33, %v1922_v31  ;;  %v1223_v25 = vpack.c.bf16 %v1192_v34, %v1191_v7 }
  0xc7   :  { %v1930_v36 = vpop.permute.xlu0 %1929  ;;  %v550_v39 = vpack.c.bf16 %v519_v35, %v518_v4  ;;  %v1937_v16 = vunpack.i.h.bf16 %v1935_v52  ;;  %v1936_v41 = vunpack.i.l.bf16 %v1935_v52 }
  0xc8   :  { %1424 = vmatmul.mubr.bf16.gmra.mrb[20].mxu0 %v1223_v25  ;;  %v1932_v45 = vunpack.i.h.bf16 %v1930_v36  ;;  %v1931_v46 = vunpack.i.l.bf16 %v1930_v36 }
  0xc9   :  { %750 = vmatmul.mubr.bf16.gmra.mrb[16].mxu1 %v550_v39  ;;  %v1162_v63 = vsel %vm51_vm2, %v2471_v1, %v1937_v16  ;;  %v1161_v5 = vsel %vm51_vm2, %v1563_v15, %v1936_v41 }
  0xca   :  { %v1945_v62 = vpop.permute.xlu1 %1944  ;;  %v486_v11 = vsel %vm51_vm2, %v133_v53, %v1931_v46  ;;  %v487_v12 = vsel %vm51_vm2, %v1563_v15, %v1932_v45  ;;  %v2080_v53 = vmov 1966171168  }
  0xcb   :  { %v1947_v20 = vunpack.i.h.bf16 %v1945_v62  ;;  %v1946_v40 = vunpack.i.l.bf16 %v1945_v62  ;;  %v1940_v42 = vpop.permute.xlu0 %1939  ;;  %v1629_v62 = vld [vmem:[%s2965_s1 + $0x101] sm:$0xff] }
  0xcc   :  { %v1942_v57 = vunpack.i.h.bf16 %v1940_v42  ;;  %v1941_v58 = vunpack.i.l.bf16 %v1940_v42 }
  0xcd   :  { %v537_v43 = vsel %vm51_vm2, %v1511_v48, %v1947_v20  ;;  %v536_v38 = vsel %vm51_vm2, %v1510_v59, %v1946_v40 }
  0xce   :  { %v553_v14 = vpack.c.bf16 %v537_v43, %v536_v38  ;;  %v1955_v44 = vpop.permute.xlu1 %1954  ;;  %v503_v19 = vsel %vm492_vm3, %v486_v11, %v1941_v58  ;;  %v504_v47 = vsel %vm492_vm3, %v487_v12, %v1942_v57 }
  0xcf   :  { %v1957_v49 = vunpack.i.h.bf16 %v1955_v44  ;;  %v1956_v51 = vunpack.i.l.bf16 %v1955_v44  ;;  %v1950_v8 = vpop.permute.xlu0 %1949 }
  0xd0   :  { %v1952_v55 = vunpack.i.h.bf16 %v1950_v8  ;;  %v1951_v56 = vunpack.i.l.bf16 %v1950_v8  ;;  %1550 = vmatprep.mubr.msk.bf16.mxu1 %vm492_vm3, %v553_v14 }
  0xd1   :  { %v1210_v60 = vsel %vm51_vm2, %v2486_v9, %v1957_v49  ;;  %v1209_v61 = vsel %vm51_vm2, %v1511_v48, %v1956_v51 }
  0xd2   :  { %v1226_v3 = vpack.c.bf16 %v1210_v60, %v1209_v61  ;;  %v1965_v6 = vpop.permute.xlu1 %1964  ;;  %v1178_v21 = vsel %vm492_vm3, %v1162_v63, %v1952_v55  ;;  %v1177_v0 = vsel %vm492_vm3, %v1161_v5, %v1951_v56  ;;  %v97_v55 = vunpack.c.l.s4 %v2080_v53 }
  0xd3   :  { %v1967_v13 = vunpack.i.h.bf16 %v1965_v6  ;;  %v1966_v17 = vunpack.i.l.bf16 %v1965_v6  ;;  %v1960_v18 = vpop.permute.xlu0 %1959 }
  0xd4   :  { %v1962_v24 = vunpack.i.h.bf16 %v1960_v18  ;;  %v1961_v26 = vunpack.i.l.bf16 %v1960_v18  ;;  %1691 = vmatprep.mubr.msk.bf16.mxu0 %vm492_vm3, %v1226_v3 }
  0xd5   :  { %v1193_v29 = vsel %vm509_vm4, %v1177_v0, %v1966_v17  ;;  %v1194_v54 = vsel %vm509_vm4, %v1178_v21, %v1967_v13 }
  0xd6   :  { %v1975_v30 = vpop.permute.xlu1 %1974  ;;  %v520_v31 = vsel %vm509_vm4, %v503_v19, %v1961_v26  ;;  %v521_v32 = vsel %vm509_vm4, %v504_v47, %v1962_v24  ;;  %v1225_v50 = vpack.c.bf16 %v1194_v54, %v1193_v29  ;;  %v98_v26 = vunpack.c.0.s8 %v97_v55 }
  0xd7   :  { %v1970_v33 = vpop.permute.xlu0 %1969  ;;  %v552_v7 = vpack.c.bf16 %v521_v32, %v520_v31  ;;  %v1977_v39 = vunpack.i.h.bf16 %v1975_v30  ;;  %v1976_v59 = vunpack.i.l.bf16 %v1975_v30 }
  0xd8   :  { %1432 = vmatmul.mubr.bf16.gmra.mrb[24].mxu0 %v1225_v50  ;;  %v1972_v40 = vunpack.i.h.bf16 %v1970_v33  ;;  %v1971_v42 = vunpack.i.l.bf16 %v1970_v33 }
  0xd9   :  { %758 = vmatmul.mubr.bf16.gmra.mrb[20].mxu1 %v552_v7  ;;  %v1164_v46 = vsel %vm51_vm2, %v2511_v22, %v1977_v39  ;;  %v1163_v49 = vsel %vm51_vm2, %v2476_v2, %v1976_v59 }
  0xda   :  { %v1985_v34 = vpop.permute.xlu1 %1984  ;;  %v488_v56 = vsel %vm51_vm2, %v2471_v1, %v1971_v42  ;;  %v489_v57 = vsel %vm51_vm2, %v2476_v2, %v1972_v40 }
  0xdb   :  { %v1987_v52 = vunpack.i.h.bf16 %v1985_v34  ;;  %v1986_v4 = vunpack.i.l.bf16 %v1985_v34  ;;  %v1980_v35 = vpop.permute.xlu0 %1979 }
  0xdc   :  { %v1982_v44 = vunpack.i.h.bf16 %v1980_v35 }
  0xdd   :  { %v539_v25 = vsel %vm51_vm2, %v2491_v10, %v1987_v52  ;;  %v538_v36 = vsel %vm51_vm2, %v2486_v9, %v1986_v4  ;;  %v99_v10 = vlaneseq  ;;  %v1981_v9 = vunpack.i.l.bf16 %v1980_v35  ;;  %v1632_v4 = vld [vmem:[%s2965_s1 + $0x131] sm:$0xff] }
  0xde   :  { %v555_v48 = vpack.c.bf16 %v539_v25, %v538_v36  ;;  %v1995_v20 = vpop.permute.xlu1 %1994  ;;  %v506_v12 = vsel %vm492_vm3, %v489_v57, %v1982_v44 }
  0xdf   :  { %v1997_v43 = vunpack.i.h.bf16 %v1995_v20  ;;  %v1996_v38 = vunpack.i.l.bf16 %v1995_v20  ;;  %v1990_v16 = vpop.permute.xlu0 %1989  ;;  %v505_v11 = vsel %vm492_vm3, %v488_v56, %v1981_v9  ;;  %v100_v19 = vshrl.u32 %v99_v10, 7 }
  0xe0   :  { %v1992_v41 = vunpack.i.h.bf16 %v1990_v16  ;;  %v1991_v14 = vunpack.i.l.bf16 %v1990_v16  ;;  %1551 = vmatprep.mubr.msk.bf16.mxu1 %vm492_vm3, %v555_v48 }
  0xe1   :  { %v1212_v15 = vsel %vm51_vm2, %v2527_v27, %v1997_v43  ;;  %v1211_v45 = vsel %vm51_vm2, %v1629_v62, %v1996_v38  ;;  %v101_v31 = vsub.s32 %v98_v26, %v100_v19 }
  0xe2   :  { %v1228_v51 = vpack.c.bf16 %v1212_v15, %v1211_v45  ;;  %v2005_v8 = vpop.permute.xlu1 %2004  ;;  %v1180_v63 = vsel %vm492_vm3, %v1164_v46, %v1992_v41  ;;  %v1179_v5 = vsel %vm492_vm3, %v1163_v49, %v1991_v14  ;;  %v89_v25 = vpop.f32.mrb[0].mxu0 }
  0xe3   :  { %v2007_v58 = vunpack.i.h.bf16 %v2005_v8  ;;  %v2006_v60 = vunpack.i.l.bf16 %v2005_v8  ;;  %v2000_v61 = vpop.permute.xlu0 %1999  ;;  %v102_v62 = vrot.slane %v89_v25, %v101_v31  ;;  %v1719_v20 = vpop.f32.mrb[1].mxu0 }
  0xe4   :  { %v2002_v3 = vunpack.i.h.bf16 %v2000_v61  ;;  %v2001_v6 = vunpack.i.l.bf16 %v2000_v61  ;;  %1692 = vmatprep.mubr.msk.bf16.mxu0 %vm492_vm3, %v1228_v51  ;;  %v92_v38 = vpop.f32.mrb[2].mxu0 }
  0xe5   :  { %v1195_v1 = vsel %vm509_vm4, %v1179_v5, %v2006_v60  ;;  %v1196_v13 = vsel %vm509_vm4, %v1180_v63, %v2007_v58  ;;  %v103_v14 = vcombine.high %v102_v62, %v102_v62  ;;  %v110_v10 = vrot.slane %v102_v62, %v101_v31  ;;  %v1720_v44 = vpop.f32.mrb[3].mxu0 }
  0xe6   :  { %v2015_v2 = vpop.permute.xlu1 %2014  ;;  %v522_v17 = vsel %vm509_vm4, %v505_v11, %v2001_v6  ;;  %v523_v18 = vsel %vm509_vm4, %v506_v12, %v2002_v3  ;;  %v1227_v21 = vpack.c.bf16 %v1196_v13, %v1195_v1  ;;  %v2803_v11 = vld [vmem:[%s2970_s3] ss:$0 sm:$0xff] }
  0xe7   :  { %v2010_v0 = vpop.permute.xlu0 %2009  ;;  %v554_v24 = vpack.c.bf16 %v523_v18, %v522_v17  ;;  %v2017_v33 = vunpack.i.h.bf16 %v2015_v2  ;;  %v2016_v7 = vunpack.i.l.bf16 %v2015_v2  ;;  %v117_v55 = vrot.slane %v103_v14, %v101_v31  ;;  %121 = vst.msk [vmem:[%s2969_s5] sm:$0x1] %vm120_vm5, %v110_v10 }
  0xe8   :  { %1440 = vmatmul.mubr.bf16.gmra.mrb[28].mxu0 %v1227_v21  ;;  %v2011_v34 = vunpack.i.l.bf16 %v2010_v0  ;;  %v2012_v36 = vunpack.i.h.bf16 %v2010_v0 }
  0xe9   :  { %766 = vmatmul.mubr.bf16.gmra.mrb[24].mxu1 %v554_v24  ;;  %v1166_v9 = vsel %vm51_vm2, %v2553_v37, %v2017_v33  ;;  %v1165_v15 = vsel %vm51_vm2, %v2516_v23, %v2016_v7  ;;  %122 = vst.msk [vmem:[%s2969_s5 + $0x1] sm:$0x1] %vm120_vm5, %v117_v55 }
  0xea   :  { %v2025_v47 = vpop.permute.xlu1 %2024  ;;  %v490_v45 = vsel %vm51_vm2, %v2511_v22, %v2011_v34  ;;  %v491_v51 = vsel %vm51_vm2, %v2516_v23, %v2012_v36 }
  0xeb   :  { %v2027_v29 = vunpack.i.h.bf16 %v2025_v47  ;;  %v2026_v54 = vunpack.i.l.bf16 %v2025_v47  ;;  %v2020_v30 = vpop.permute.xlu0 %2019 }
  0xec   :  { %v2022_v40 = vunpack.i.h.bf16 %v2020_v30  ;;  %v2021_v42 = vunpack.i.l.bf16 %v2020_v30 }
  0xed   :  { %v541_v32 = vsel %vm51_vm2, %v2532_v28, %v2027_v29  ;;  %v540_v50 = vsel %vm51_vm2, %v2527_v27, %v2026_v54 }
  0xee   :  { %v557_v52 = vpack.c.bf16 %v541_v32, %v540_v50  ;;  %v2035_v35 = vpop.permute.xlu1 %2034  ;;  %v507_v58 = vsel %vm492_vm3, %v490_v45, %v2021_v42  ;;  %v508_v23 = vsel %vm492_vm3, %v491_v51, %v2022_v40 }
  0xef   :  { %v2037_v39 = vunpack.i.h.bf16 %v2035_v35  ;;  %v2036_v59 = vunpack.i.l.bf16 %v2035_v35  ;;  %v2030_v48 = vpop.permute.xlu0 %2029 }
  0xf0   :  { %v2032_v27 = vunpack.i.h.bf16 %v2030_v48  ;;  %v2031_v43 = vunpack.i.l.bf16 %v2030_v48  ;;  %1552 = vmatprep.mubr.msk.bf16.mxu1 %vm492_vm3, %v557_v52 }
  0xf1   :  { %v1214_v16 = vsel %vm51_vm2, %v1632_v4, %v2037_v39  ;;  %v1213_v41 = vsel %vm51_vm2, %v2532_v28, %v2036_v59 }
  0xf2   :  { %v1230_v46 = vpack.c.bf16 %v1214_v16, %v1213_v41  ;;  %v2045_v49 = vpop.permute.xlu1 %2044  ;;  %v1182_v37 = vsel %vm492_vm3, %v1166_v9, %v2032_v27  ;;  %v1181_v56 = vsel %vm492_vm3, %v1165_v15, %v2031_v43 }
  0xf3   :  { %v2047_v8 = vunpack.i.h.bf16 %v2045_v49  ;;  %v2046_v53 = vunpack.i.l.bf16 %v2045_v49  ;;  %v2040_v28 = vpop.permute.xlu0 %2039 }
  0xf4   :  { %v2042_v57 = vunpack.i.h.bf16 %v2040_v28  ;;  %v2041_v22 = vunpack.i.l.bf16 %v2040_v28  ;;  %1693 = vmatprep.mubr.msk.bf16.mxu0 %vm492_vm3, %v1230_v46 }
  0xf5   :  { %v1197_v60 = vsel %vm509_vm4, %v1181_v56, %v2046_v53  ;;  %v1198_v61 = vsel %vm509_vm4, %v1182_v37, %v2047_v8 }
  0xf6   :  { %v524_v63 = vsel %vm509_vm4, %v507_v58, %v2041_v22  ;;  %v525_v5 = vsel %vm509_vm4, %v508_v23, %v2042_v57  ;;  %v1229_v3 = vpack.c.bf16 %v1198_v61, %v1197_v60 }
  0xf7   :  { %v556_v6 = vpack.c.bf16 %v525_v5, %v524_v63 }
  0xf8   :  { %1448 = vmatmul.mubr.bf16.gmra.mrb[32].mxu0 %v1229_v3 }
  0xf9   :  { %774 = vmatmul.mubr.bf16.gmra.mrb[28].mxu1 %v556_v6 }
 0x15b   :  { %v1393_v12 = vpop.f32.mrb[4].mxu0 }
 0x15c   :  { %v719_v1 = vpop.f32.mrb[0].mxu1  ;;  %v1394_v13 = vadd.f32 %v2803_v11, %v1393_v12  ;;  %v1395_v2 = vpop.f32.mrb[5].mxu0 }
 0x15d   :  { %v720_v17 = vadd.f32 %v2803_v11, %v719_v1  ;;  %v721_v18 = vpop.f32.mrb[1].mxu1  ;;  %v1396_v21 = vpop.f32.mrb[6].mxu0 }
 0x15e   :  { %1694 = vst.msk [vmem:[%s2971_s6 + $0x8] sm:$0xff] %vm51_vm2, %v1394_v13  ;;  %v722_v0 = vpop.f32.mrb[2].mxu1  ;;  %v1397_v24 = vadd.f32 %v2803_v11, %v1396_v21  ;;  %v1398_v26 = vpop.f32.mrb[7].mxu0 }
 0x15f   :  { %782 = vst.msk [vmem:[%s2971_s6] sm:$0xff] %vm51_vm2, %v720_v17  ;;  %v723_v19 = vadd.f32 %v2803_v11, %v722_v0  ;;  %v724_v47 = vpop.f32.mrb[3].mxu1 }
 0x160   :  { %1695 = vst.msk [vmem:[%s2971_s6 + $0x18] sm:$0xff] %vm51_vm2, %v1397_v24 }
 0x161   :  { %783 = vst.msk [vmem:[%s2971_s6 + $0x10] sm:$0xff] %vm51_vm2, %v723_v19 }
 0x16b   :  { %v1401_v29 = vpop.f32.mrb[8].mxu0 }
 0x16c   :  { %v727_v54 = vpop.f32.mrb[4].mxu1  ;;  %v1402_v30 = vadd.f32 %v2803_v11, %v1401_v29  ;;  %v1403_v31 = vpop.f32.mrb[9].mxu0 }
 0x16d   :  { %v728_v32 = vadd.f32 %v2803_v11, %v727_v54  ;;  %v729_v50 = vpop.f32.mrb[5].mxu1  ;;  %v1404_v33 = vpop.f32.mrb[10].mxu0 }
 0x16e   :  { %1696 = vst.msk [vmem:[%s2971_s6 + $0x28] sm:$0xff] %vm51_vm2, %v1402_v30  ;;  %v730_v7 = vpop.f32.mrb[6].mxu1  ;;  %v1405_v34 = vadd.f32 %v2803_v11, %v1404_v33  ;;  %v1406_v52 = vpop.f32.mrb[11].mxu0 }
 0x16f   :  { %784 = vst.msk [vmem:[%s2971_s6 + $0x20] sm:$0xff] %vm51_vm2, %v728_v32  ;;  %v731_v4 = vadd.f32 %v2803_v11, %v730_v7  ;;  %v732_v35 = vpop.f32.mrb[7].mxu1 }
 0x170   :  { %1697 = vst.msk [vmem:[%s2971_s6 + $0x38] sm:$0xff] %vm51_vm2, %v1405_v34 }
 0x171   :  { %785 = vst.msk [vmem:[%s2971_s6 + $0x30] sm:$0xff] %vm51_vm2, %v731_v4 }
 0x17b   :  { %v1409_v25 = vpop.f32.mrb[12].mxu0 }
 0x17c   :  { %v735_v36 = vpop.f32.mrb[8].mxu1  ;;  %v1410_v39 = vadd.f32 %v2803_v11, %v1409_v25  ;;  %v1411_v59 = vpop.f32.mrb[13].mxu0 }
 0x17d   :  { %v736_v48 = vadd.f32 %v2803_v11, %v735_v36  ;;  %v737_v62 = vpop.f32.mrb[9].mxu1  ;;  %v1412_v20 = vpop.f32.mrb[14].mxu0 }
 0x17e   :  { %1698 = vst.msk [vmem:[%s2971_s6 + $0x48] sm:$0xff] %vm51_vm2, %v1410_v39  ;;  %v738_v40 = vpop.f32.mrb[10].mxu1  ;;  %v1413_v42 = vadd.f32 %v2803_v11, %v1412_v20  ;;  %v1414_v27 = vpop.f32.mrb[15].mxu0 }
 0x17f   :  { %786 = vst.msk [vmem:[%s2971_s6 + $0x40] sm:$0xff] %vm51_vm2, %v736_v48  ;;  %v739_v43 = vadd.f32 %v2803_v11, %v738_v40  ;;  %v740_v38 = vpop.f32.mrb[11].mxu1 }
 0x180   :  { %1699 = vst.msk [vmem:[%s2971_s6 + $0x58] sm:$0xff] %vm51_vm2, %v1413_v42 }
 0x181   :  { %787 = vst.msk [vmem:[%s2971_s6 + $0x50] sm:$0xff] %vm51_vm2, %v739_v43 }
 0x18b   :  { %v1417_v16 = vpop.f32.mrb[16].mxu0 }
 0x18c   :  { %v743_v41 = vpop.f32.mrb[12].mxu1  ;;  %v1418_v14 = vadd.f32 %v2803_v11, %v1417_v16  ;;  %v1419_v10 = vpop.f32.mrb[17].mxu0 }
 0x18d   :  { %v744_v44 = vadd.f32 %v2803_v11, %v743_v41  ;;  %v745_v9 = vpop.f32.mrb[13].mxu1  ;;  %v1420_v15 = vpop.f32.mrb[18].mxu0 }
 0x18e   :  { %1700 = vst.msk [vmem:[%s2971_s6 + $0x68] sm:$0xff] %vm51_vm2, %v1418_v14  ;;  %v746_v45 = vpop.f32.mrb[14].mxu1  ;;  %v1421_v46 = vadd.f32 %v2803_v11, %v1420_v15  ;;  %v1422_v49 = vpop.f32.mrb[19].mxu0 }
 0x18f   :  { %788 = vst.msk [vmem:[%s2971_s6 + $0x60] sm:$0xff] %vm51_vm2, %v744_v44  ;;  %v747_v51 = vadd.f32 %v2803_v11, %v746_v45  ;;  %v748_v8 = vpop.f32.mrb[15].mxu1 }
 0x190   :  { %1701 = vst.msk [vmem:[%s2971_s6 + $0x78] sm:$0xff] %vm51_vm2, %v1421_v46 }
 0x191   :  { %789 = vst.msk [vmem:[%s2971_s6 + $0x70] sm:$0xff] %vm51_vm2, %v747_v51 }
 0x19b   :  { %v1425_v53 = vpop.f32.mrb[20].mxu0 }
 0x19c   :  { %v751_v28 = vpop.f32.mrb[16].mxu1  ;;  %v1426_v55 = vadd.f32 %v2803_v11, %v1425_v53  ;;  %v1427_v37 = vpop.f32.mrb[21].mxu0 }
 0x19d   :  { %v752_v56 = vadd.f32 %v2803_v11, %v751_v28  ;;  %v753_v57 = vpop.f32.mrb[17].mxu1  ;;  %v1428_v22 = vpop.f32.mrb[22].mxu0 }
 0x19e   :  { %1702 = vst.msk [vmem:[%s2971_s6 + $0x88] sm:$0xff] %vm51_vm2, %v1426_v55  ;;  %v754_v58 = vpop.f32.mrb[18].mxu1  ;;  %v1429_v23 = vadd.f32 %v2803_v11, %v1428_v22  ;;  %v1430_v60 = vpop.f32.mrb[23].mxu0 }
 0x19f   :  { %790 = vst.msk [vmem:[%s2971_s6 + $0x80] sm:$0xff] %vm51_vm2, %v752_v56  ;;  %v755_v61 = vadd.f32 %v2803_v11, %v754_v58  ;;  %v756_v63 = vpop.f32.mrb[19].mxu1 }
 0x1a0   :  { %1703 = vst.msk [vmem:[%s2971_s6 + $0x98] sm:$0xff] %vm51_vm2, %v1429_v23 }
 0x1a1   :  { %791 = vst.msk [vmem:[%s2971_s6 + $0x90] sm:$0xff] %vm51_vm2, %v755_v61 }
 0x1ab   :  { %v1433_v5 = vpop.f32.mrb[24].mxu0 }
 0x1ac   :  { %v759_v3 = vpop.f32.mrb[20].mxu1  ;;  %v1434_v6 = vadd.f32 %v2803_v11, %v1433_v5  ;;  %v1435_v12 = vpop.f32.mrb[25].mxu0 }
 0x1ad   :  { %v760_v1 = vadd.f32 %v2803_v11, %v759_v3  ;;  %v761_v13 = vpop.f32.mrb[21].mxu1  ;;  %v1436_v2 = vpop.f32.mrb[26].mxu0 }
 0x1ae   :  { %1704 = vst.msk [vmem:[%s2971_s6 + $0xa8] sm:$0xff] %vm51_vm2, %v1434_v6  ;;  %v762_v17 = vpop.f32.mrb[22].mxu1  ;;  %v1437_v18 = vadd.f32 %v2803_v11, %v1436_v2  ;;  %v1438_v21 = vpop.f32.mrb[27].mxu0 }
 0x1af   :  { %792 = vst.msk [vmem:[%s2971_s6 + $0xa0] sm:$0xff] %vm51_vm2, %v760_v1  ;;  %v763_v0 = vadd.f32 %v2803_v11, %v762_v17  ;;  %v764_v24 = vpop.f32.mrb[23].mxu1 }
 0x1b0   :  { %1705 = vst.msk [vmem:[%s2971_s6 + $0xb8] sm:$0xff] %vm51_vm2, %v1437_v18 }
 0x1b1   :  { %793 = vst.msk [vmem:[%s2971_s6 + $0xb0] sm:$0xff] %vm51_vm2, %v763_v0 }
 0x1bb   :  { %v1441_v26 = vpop.f32.mrb[28].mxu0 }
 0x1bc   :  { %v767_v19 = vpop.f32.mrb[24].mxu1  ;;  %v1442_v47 = vadd.f32 %v2803_v11, %v1441_v26  ;;  %v1443_v29 = vpop.f32.mrb[29].mxu0 }
 0x1bd   :  { %v768_v54 = vadd.f32 %v2803_v11, %v767_v19  ;;  %v769_v30 = vpop.f32.mrb[25].mxu1  ;;  %v1444_v31 = vpop.f32.mrb[30].mxu0 }
 0x1be   :  { %1706 = vst.msk [vmem:[%s2971_s6 + $0xc8] sm:$0xff] %vm51_vm2, %v1442_v47  ;;  %v770_v32 = vpop.f32.mrb[26].mxu1  ;;  %v1445_v50 = vadd.f32 %v2803_v11, %v1444_v31  ;;  %v1446_v33 = vpop.f32.mrb[31].mxu0 }
 0x1bf   :  { %794 = vst.msk [vmem:[%s2971_s6 + $0xc0] sm:$0xff] %vm51_vm2, %v768_v54  ;;  %v771_v7 = vadd.f32 %v2803_v11, %v770_v32  ;;  %v772_v34 = vpop.f32.mrb[27].mxu1 }
 0x1c0   :  { %1707 = vst.msk [vmem:[%s2971_s6 + $0xd8] sm:$0xff] %vm51_vm2, %v1445_v50 }
 0x1c1   :  { %795 = vst.msk [vmem:[%s2971_s6 + $0xd0] sm:$0xff] %vm51_vm2, %v771_v7 }
 0x1cb   :  { %v1449_v52 = vpop.f32.mrb[32].mxu0 }
 0x1cc   :  { %v775_v4 = vpop.f32.mrb[28].mxu1  ;;  %v1450_v35 = vadd.f32 %v2803_v11, %v1449_v52  ;;  %v1451_v25 = vpop.f32.mrb[33].mxu0 }
 0x1cd   :  { %v776_v36 = vadd.f32 %v2803_v11, %v775_v4  ;;  %v777_v39 = vpop.f32.mrb[29].mxu1  ;;  %v1452_v59 = vpop.f32.mrb[34].mxu0 }
 0x1ce   :  { %1708 = vst.msk [vmem:[%s2971_s6 + $0xe8] sm:$0xff] %vm51_vm2, %v1450_v35  ;;  %v778_v48 = vpop.f32.mrb[30].mxu1  ;;  %v1453_v62 = vadd.f32 %v2803_v11, %v1452_v59  ;;  %v1454_v20 = vpop.f32.mrb[35].mxu0 }
 0x1cf   :  { %796 = vst.msk [vmem:[%s2971_s6 + $0xe0] sm:$0xff] %vm51_vm2, %v776_v36  ;;  %v779_v40 = vadd.f32 %v2803_v11, %v778_v48  ;;  %v780_v42 = vpop.f32.mrb[31].mxu1 }
 0x1d0   :  { %1709 = vst.msk [vmem:[%s2971_s6 + $0xf8] sm:$0xff] %vm51_vm2, %v1453_v62 }
 0x1d1   :  { %797 = vst.msk [vmem:[%s2971_s6 + $0xf0] sm:$0xff] %vm51_vm2, %v779_v40 }

</bundles_post_ra>
